<compile_context>
chip_gen: v7x
topology: tpu7x:2x2x1
jax: 0.10.0
libtpu: 0.0.40
codegen_flags: <defaults>
</compile_context>

<pallas_src>
import functools

import jax
import jax.numpy as jnp
from jax.experimental import pallas as pl
from jax.experimental.pallas import tpu as pltpu

EPS = 1e-5
KSIZE = 16
PAD = 7


def _bn_swish(v, scale, shift):
    # v: (rows, C) f32; scale/shift: (1, C) f32 (folded inference BN).
    y = v * scale + shift
    # swish(y) = y * sigmoid(y) = y / (1 + exp(-y)); exp + reciprocal on the EUP.
    return y * pl.reciprocal(1.0 + jnp.exp(-y), approx=True)


def _dual_conv_kernel(x_ref, bn1_ref, w1_ref, bn2_ref, w2_ref, bn3_ref, w3_ref,
                      b23_ref, o_ref):
    # x_ref:  (NB, L, C_in) f32           o_ref: (NB, L, C_out) f32
    # bn*_ref: (2, C) f32 [scale, shift]  (bn2 shift already absorbs conv1 bias)
    # w1_ref: (K*C_in, C_out) bf16        w2_ref: (K*C_out, C_out) bf16
    # w3_ref: (C_in, C_out) bf16          b23_ref: (1, C_out) f32  (= b2 + b3)
    nb, L, c_in = x_ref.shape
    c_out = o_ref.shape[2]
    L1 = L - 1   # length after first k=16, p=7 conv
    L2 = L - 2   # length after second k=16, p=7 conv

    x_all = x_ref[...]                                   # one full-block load
    s1, t1 = bn1_ref[0:1, :], bn1_ref[1:2, :]
    s2, t2 = bn2_ref[0:1, :], bn2_ref[1:2, :]
    s3, t3 = bn3_ref[0:1, :], bn3_ref[1:2, :]
    w1 = w1_ref[...]
    w2 = w2_ref[...]
    w3 = w3_ref[...]
    b23 = b23_ref[...]
    zp1 = jnp.zeros((PAD, c_in), jnp.float32)
    zp2 = jnp.zeros((PAD, c_out), jnp.float32)

    outs = []
    for i in range(nb):                                  # static unroll (nb small)
        x = x_all[i]                                     # (L, C_in)

        # -------- branch A stage 1: BN1 + Swish + Conv1 (im2col, 1 matmul) -----
        h1 = _bn_swish(x, s1, t1)                        # (L, C_in)
        p1 = jnp.concatenate([zp1, h1, zp1], axis=0)     # (L+2P, C_in)
        slab1 = jnp.concatenate([p1[k:k + L1, :] for k in range(KSIZE)], axis=1)
        a1 = jnp.dot(slab1.astype(jnp.bfloat16), w1,
                     preferred_element_type=jnp.float32)          # (L1, C_out)

        # -------- branch A stage 2: BN2 (b1 folded) + Swish + Conv2 ------------
        h2 = _bn_swish(a1, s2, t2)                       # (L1, C_out)
        p2 = jnp.concatenate([zp2, h2, zp2], axis=0)     # (L1+2P, C_out)
        slab2 = jnp.concatenate([p2[k:k + L2, :] for k in range(KSIZE)], axis=1)
        a2 = jnp.dot(slab2.astype(jnp.bfloat16), w2,
                     preferred_element_type=jnp.float32)          # (L2, C_out)

        # -------- branch B: BN3 + Swish + 1x1 conv -----------------------------
        h3 = _bn_swish(x, s3, t3)                        # (L, C_in)
        y = jnp.dot(h3.astype(jnp.bfloat16), w3,
                    preferred_element_type=jnp.float32)           # (L, C_out)

        # ---- ReplicationPad1d((1,1)) fused with residual add + (b2+b3) --------
        a = jnp.concatenate([a2[0:1, :], a2, a2[L2 - 1:L2, :]], axis=0)  # (L, C_out)
        outs.append(a + y + b23)

    o_ref[...] = jnp.stack(outs, axis=0).astype(o_ref.dtype)   # one aligned store


def _fold_bn(bn, bias=None):
    # bn: (4, C) rows = [gamma, beta, running_mean, running_var] -> (2, C).
    # If `bias` is given, it is the bias of the conv feeding this BN and is
    # absorbed into the shift (exact: BN is affine).
    gamma, beta, mean, var = bn[0], bn[1], bn[2], bn[3]
    scale = gamma * jax.lax.rsqrt(var + EPS)
    shift = beta - mean * scale
    if bias is not None:
        shift = shift + scale * bias
    return jnp.stack([scale, shift], axis=0).astype(jnp.float32)


@functools.partial(jax.jit, static_argnames=("n_block",))
def my_conv1d_pad_same_dual(x_ncl, bn1, w1, b1, bn2, w2, b2, bn3, w3, b3,
                            *, n_block=2):
    """x_ncl: (N, C_in, L). Weights in PyTorch layout: w1/w2 (C_out, C_in/out, 16),
    w3 (C_out, C_in, 1). bn*: (4, C) = [gamma, beta, mean, var]. Returns (N, C_out, L)."""
    N, c_in, L = x_ncl.shape
    c_out = w1.shape[0]
    nb = n_block if (N % n_block == 0) else 1                     # samples / grid step

    x_nlc = jnp.transpose(x_ncl, (0, 2, 1)).astype(jnp.float32)   # (N, L, C_in)

    # im2col weight layout: [k*C + c, o] = w[o, c, k]; bf16 operands for the MXU.
    w1_f = jnp.transpose(w1, (2, 1, 0)).reshape(KSIZE * c_in, c_out).astype(jnp.bfloat16)
    w2_f = jnp.transpose(w2, (2, 1, 0)).reshape(KSIZE * c_out, c_out).astype(jnp.bfloat16)
    w3_f = jnp.transpose(w3[:, :, 0], (1, 0)).astype(jnp.bfloat16)  # (C_in, C_out)
    bn1_f = _fold_bn(bn1)                                          # (2, C_in)
    bn2_f = _fold_bn(bn2, bias=b1)                                 # (2, C_out), absorbs b1
    bn3_f = _fold_bn(bn3)                                          # (2, C_in)
    b23_f = (b2 + b3).reshape(1, c_out).astype(jnp.float32)        # single final bias

    full = lambda shape: pl.BlockSpec(shape, lambda n: (0,) * len(shape))

    out_nlc = pl.pallas_call(
        _dual_conv_kernel,
        out_shape=jax.ShapeDtypeStruct((N, L, c_out), jnp.float32),
        grid_spec=pltpu.PrefetchScalarGridSpec(
            num_scalar_prefetch=0,
            grid=(N // nb,),
            in_specs=[
                pl.BlockSpec((nb, L, c_in), lambda n: (n, 0, 0)),   # x
                full((2, c_in)),                                    # bn1 (scale,shift)
                full((KSIZE * c_in, c_out)),                        # w1 im2col
                full((2, c_out)),                                   # bn2 (+ b1 folded)
                full((KSIZE * c_out, c_out)),                       # w2 im2col
                full((2, c_in)),                                    # bn3
                full((c_in, c_out)),                                # w3 (1x1)
                full((1, c_out)),                                   # b2 + b3
            ],
            out_specs=pl.BlockSpec((nb, L, c_out), lambda n: (n, 0, 0)),
        ),
        compiler_params=pltpu.CompilerParams(
            dimension_semantics=("parallel",)),
    )(x_nlc, bn1_f, w1_f, bn2_f, w2_f, bn3_f, w3_f, b23_f)

    return jnp.transpose(out_nlc, (0, 2, 1))                        # (N, C_out, L)


# ------------------------------ pure-JAX reference ---------------------------
def _reference(x, bn1, w1, b1, bn2, w2, b2, bn3, w3, b3):
    def bnsw(v, bn):
        g, be, m, va = bn[0], bn[1], bn[2], bn[3]
        y = (v - m[None, :, None]) * (g[None, :, None] /
                                      jnp.sqrt(va[None, :, None] + EPS)) + be[None, :, None]
        return y * (1.0 / (1.0 + jnp.exp(-y)))

    def conv(v, w, b, pad):
        o = jax.lax.conv_general_dilated(
            v, w, (1,), [(pad, pad)], dimension_numbers=("NCH", "OIH", "NCH"),
            precision=jax.lax.Precision.HIGHEST)
        return o + b[None, :, None]

    out = bnsw(x, bn1)
    out = conv(out, w1, b1, 7)
    out = bnsw(out, bn2)
    out = conv(out, w2, b2, 7)
    out = jnp.concatenate([out[:, :, :1], out, out[:, :, -1:]], axis=2)  # ReplicationPad1d((1,1))
    sc = bnsw(x, bn3)
    sc = conv(sc, w3, b3, 0)
    return out + sc


if __name__ == "__main__":
    N, C_IN, C_OUT, L = 4, 4, 8, 32

    key = jax.random.PRNGKey(0)
    ks = jax.random.split(key, 16)

    def bn_params(k, c):
        k0, k1, k2, k3 = jax.random.split(k, 4)
        gamma = 0.8 + 0.4 * jax.random.uniform(k0, (c,), jnp.float32)
        beta = 0.1 * jax.random.normal(k1, (c,), jnp.float32)
        mean = 0.1 * jax.random.normal(k2, (c,), jnp.float32)
        var = 0.5 + jax.random.uniform(k3, (c,), jnp.float32)
        return jnp.stack([gamma, beta, mean, var], axis=0)            # (4, c)

    x = jax.random.normal(ks[0], (N, C_IN, L), jnp.float32)

    bn1 = bn_params(ks[1], C_IN)
    w1 = 0.1 * jax.random.normal(ks[2], (C_OUT, C_IN, KSIZE), jnp.float32)
    b1 = 0.1 * jax.random.normal(ks[3], (C_OUT,), jnp.float32)
    bn2 = bn_params(ks[4], C_OUT)
    w2 = 0.1 * jax.random.normal(ks[5], (C_OUT, C_OUT, KSIZE), jnp.float32)
    b2 = 0.1 * jax.random.normal(ks[6], (C_OUT,), jnp.float32)
    bn3 = bn_params(ks[7], C_IN)
    w3 = 0.1 * jax.random.normal(ks[8], (C_OUT, C_IN, 1), jnp.float32)
    b3 = 0.1 * jax.random.normal(ks[9], (C_OUT,), jnp.float32)

    out = my_conv1d_pad_same_dual(x, bn1, w1, b1, bn2, w2, b2, bn3, w3, b3)
    out = jax.block_until_ready(out)

    ref = _reference(x, bn1, w1, b1, bn2, w2, b2, bn3, w3, b3)
    assert out.shape == (N, C_OUT, L), out.shape
    assert jnp.allclose(out, ref, rtol=1e-2, atol=1e-2), float(jnp.max(jnp.abs(out - ref)))

    print("KERNEL_OK")
</pallas_src>

<mosaic_0001>
module attributes {stable_mosaic.version = 11 : i64} {
  func.func @_dual_conv_kernel(%arg0: i32, %arg1: memref<2x32x4xf32, #tpu.memory_space<vmem>>, %arg2: memref<2x4xf32, #tpu.memory_space<vmem>>, %arg3: memref<64x8xbf16, #tpu.memory_space<vmem>>, %arg4: memref<2x8xf32, #tpu.memory_space<vmem>>, %arg5: memref<128x8xbf16, #tpu.memory_space<vmem>>, %arg6: memref<2x4xf32, #tpu.memory_space<vmem>>, %arg7: memref<4x8xbf16, #tpu.memory_space<vmem>>, %arg8: memref<1x8xf32, #tpu.memory_space<vmem>>, %arg9: memref<2x32x8xf32, #tpu.memory_space<vmem>>) attributes {dimension_semantics = [#tpu.dimension_semantics<parallel>], iteration_bounds = array<i64: 2>, scalar_prefetch = 0 : i64, scratch_operands = 0 : i64, tpu.core_type = #tpu.core_type<tc>, window_params = [{transform_indices = @transform_0, window_bounds = array<i64: 2, 32, 4>}, {pipeline_mode = #tpu.pipeline_mode<synchronous>, transform_indices = @transform_1, window_bounds = array<i64: 2, 4>}, {pipeline_mode = #tpu.pipeline_mode<synchronous>, transform_indices = @transform_2, window_bounds = array<i64: 64, 8>}, {pipeline_mode = #tpu.pipeline_mode<synchronous>, transform_indices = @transform_3, window_bounds = array<i64: 2, 8>}, {pipeline_mode = #tpu.pipeline_mode<synchronous>, transform_indices = @transform_4, window_bounds = array<i64: 128, 8>}, {pipeline_mode = #tpu.pipeline_mode<synchronous>, transform_indices = @transform_5, window_bounds = array<i64: 2, 4>}, {pipeline_mode = #tpu.pipeline_mode<synchronous>, transform_indices = @transform_6, window_bounds = array<i64: 4, 8>}, {pipeline_mode = #tpu.pipeline_mode<synchronous>, transform_indices = @transform_7, window_bounds = array<i64: 1, 8>}, {transform_indices = @transform_8, window_bounds = array<i64: 2, 32, 8>}]} {
    %c0 = arith.constant 0 : index
    %c0_0 = arith.constant 0 : index
    %c0_1 = arith.constant 0 : index
    %0 = vector.load %arg1[%c0, %c0_0, %c0_1] : memref<2x32x4xf32, #tpu.memory_space<vmem>>, vector<2x32x4xf32>
    %c0_2 = arith.constant 0 : index
    %c0_3 = arith.constant 0 : index
    %1 = vector.load %arg2[%c0_2, %c0_3] : memref<2x4xf32, #tpu.memory_space<vmem>>, vector<1x4xf32>
    %c1 = arith.constant 1 : index
    %c0_4 = arith.constant 0 : index
    %2 = vector.load %arg2[%c1, %c0_4] : memref<2x4xf32, #tpu.memory_space<vmem>>, vector<1x4xf32>
    %c0_5 = arith.constant 0 : index
    %c0_6 = arith.constant 0 : index
    %3 = vector.load %arg4[%c0_5, %c0_6] : memref<2x8xf32, #tpu.memory_space<vmem>>, vector<1x8xf32>
    %c1_7 = arith.constant 1 : index
    %c0_8 = arith.constant 0 : index
    %4 = vector.load %arg4[%c1_7, %c0_8] : memref<2x8xf32, #tpu.memory_space<vmem>>, vector<1x8xf32>
    %c0_9 = arith.constant 0 : index
    %c0_10 = arith.constant 0 : index
    %5 = vector.load %arg6[%c0_9, %c0_10] : memref<2x4xf32, #tpu.memory_space<vmem>>, vector<1x4xf32>
    %c1_11 = arith.constant 1 : index
    %c0_12 = arith.constant 0 : index
    %6 = vector.load %arg6[%c1_11, %c0_12] : memref<2x4xf32, #tpu.memory_space<vmem>>, vector<1x4xf32>
    %c0_13 = arith.constant 0 : index
    %c0_14 = arith.constant 0 : index
    %7 = vector.load %arg3[%c0_13, %c0_14] : memref<64x8xbf16, #tpu.memory_space<vmem>>, vector<64x8xbf16>
    %c0_15 = arith.constant 0 : index
    %c0_16 = arith.constant 0 : index
    %8 = vector.load %arg5[%c0_15, %c0_16] : memref<128x8xbf16, #tpu.memory_space<vmem>>, vector<128x8xbf16>
    %c0_17 = arith.constant 0 : index
    %c0_18 = arith.constant 0 : index
    %9 = vector.load %arg7[%c0_17, %c0_18] : memref<4x8xbf16, #tpu.memory_space<vmem>>, vector<4x8xbf16>
    %c0_19 = arith.constant 0 : index
    %c0_20 = arith.constant 0 : index
    %10 = vector.load %arg8[%c0_19, %c0_20] : memref<1x8xf32, #tpu.memory_space<vmem>>, vector<1x8xf32>
    %cst = arith.constant 0.000000e+00 : f32
    %11 = vector.broadcast %cst : f32 to vector<7x4xf32>
    %cst_21 = arith.constant 0.000000e+00 : f32
    %12 = vector.broadcast %cst_21 : f32 to vector<7x8xf32>
    %13 = vector.extract_strided_slice %0 {offsets = [0, 0, 0], sizes = [1, 32, 4], strides = [1, 1, 1]} : vector<2x32x4xf32> to vector<1x32x4xf32>
    %14 = vector.shape_cast %13 : vector<1x32x4xf32> to vector<32x4xf32>
    %15 = vector.broadcast %1 : vector<1x4xf32> to vector<32x4xf32>
    %16 = arith.mulf %14, %15 : vector<32x4xf32>
    %17 = vector.broadcast %2 : vector<1x4xf32> to vector<32x4xf32>
    %18 = arith.addf %16, %17 : vector<32x4xf32>
    %cst_22 = arith.constant 0.000000e+00 : f32
    %19 = vector.broadcast %cst_22 : f32 to vector<32x4xf32>
    %20 = arith.subf %19, %18 : vector<32x4xf32>
    %21 = math.exp %20 : vector<32x4xf32>
    %cst_23 = arith.constant 1.000000e+00 : f32
    %22 = vector.broadcast %cst_23 : f32 to vector<32x4xf32>
    %23 = arith.addf %22, %21 : vector<32x4xf32>
    %24 = tpu.reciprocal %23 {approx = true} : vector<32x4xf32> -> vector<32x4xf32>
    %25 = arith.mulf %18, %24 : vector<32x4xf32>
    %26 = tpu.concatenate %11, %25, %11 in 0 : vector<7x4xf32>, vector<32x4xf32>, vector<7x4xf32> -> vector<46x4xf32>
    %27 = vector.extract_strided_slice %26 {offsets = [0, 0], sizes = [31, 4], strides = [1, 1]} : vector<46x4xf32> to vector<31x4xf32>
    %28 = vector.extract_strided_slice %26 {offsets = [1, 0], sizes = [31, 4], strides = [1, 1]} : vector<46x4xf32> to vector<31x4xf32>
    %29 = vector.extract_strided_slice %26 {offsets = [2, 0], sizes = [31, 4], strides = [1, 1]} : vector<46x4xf32> to vector<31x4xf32>
    %30 = vector.extract_strided_slice %26 {offsets = [3, 0], sizes = [31, 4], strides = [1, 1]} : vector<46x4xf32> to vector<31x4xf32>
    %31 = vector.extract_strided_slice %26 {offsets = [4, 0], sizes = [31, 4], strides = [1, 1]} : vector<46x4xf32> to vector<31x4xf32>
    %32 = vector.extract_strided_slice %26 {offsets = [5, 0], sizes = [31, 4], strides = [1, 1]} : vector<46x4xf32> to vector<31x4xf32>
    %33 = vector.extract_strided_slice %26 {offsets = [6, 0], sizes = [31, 4], strides = [1, 1]} : vector<46x4xf32> to vector<31x4xf32>
    %34 = vector.extract_strided_slice %26 {offsets = [7, 0], sizes = [31, 4], strides = [1, 1]} : vector<46x4xf32> to vector<31x4xf32>
    %35 = vector.extract_strided_slice %26 {offsets = [8, 0], sizes = [31, 4], strides = [1, 1]} : vector<46x4xf32> to vector<31x4xf32>
    %36 = vector.extract_strided_slice %26 {offsets = [9, 0], sizes = [31, 4], strides = [1, 1]} : vector<46x4xf32> to vector<31x4xf32>
    %37 = vector.extract_strided_slice %26 {offsets = [10, 0], sizes = [31, 4], strides = [1, 1]} : vector<46x4xf32> to vector<31x4xf32>
    %38 = vector.extract_strided_slice %26 {offsets = [11, 0], sizes = [31, 4], strides = [1, 1]} : vector<46x4xf32> to vector<31x4xf32>
    %39 = vector.extract_strided_slice %26 {offsets = [12, 0], sizes = [31, 4], strides = [1, 1]} : vector<46x4xf32> to vector<31x4xf32>
    %40 = vector.extract_strided_slice %26 {offsets = [13, 0], sizes = [31, 4], strides = [1, 1]} : vector<46x4xf32> to vector<31x4xf32>
    %41 = vector.extract_strided_slice %26 {offsets = [14, 0], sizes = [31, 4], strides = [1, 1]} : vector<46x4xf32> to vector<31x4xf32>
    %42 = vector.extract_strided_slice %26 {offsets = [15, 0], sizes = [31, 4], strides = [1, 1]} : vector<46x4xf32> to vector<31x4xf32>
    %43 = tpu.concatenate %27, %28, %29, %30, %31, %32, %33, %34, %35, %36, %37, %38, %39, %40, %41, %42 in 1 : vector<31x4xf32>, vector<31x4xf32>, vector<31x4xf32>, vector<31x4xf32>, vector<31x4xf32>, vector<31x4xf32>, vector<31x4xf32>, vector<31x4xf32>, vector<31x4xf32>, vector<31x4xf32>, vector<31x4xf32>, vector<31x4xf32>, vector<31x4xf32>, vector<31x4xf32>, vector<31x4xf32>, vector<31x4xf32> -> vector<31x64xf32>
    %44 = arith.truncf %43 : vector<31x64xf32> to vector<31x64xbf16>
    %cst_24 = arith.constant dense<0.000000e+00> : vector<31x8xf32>
    %45 = tpu.matmul %44, %7, %cst_24 {dimension_numbers = #tpu.dot_dimension_numbers<[1], [0], [0], [1], [0, 0, 1, 1], [], []>} : vector<31x64xbf16>, vector<64x8xbf16>, vector<31x8xf32> -> vector<31x8xf32>
    %46 = vector.broadcast %3 : vector<1x8xf32> to vector<31x8xf32>
    %47 = arith.mulf %45, %46 : vector<31x8xf32>
    %48 = vector.broadcast %4 : vector<1x8xf32> to vector<31x8xf32>
    %49 = arith.addf %47, %48 : vector<31x8xf32>
    %cst_25 = arith.constant 0.000000e+00 : f32
    %50 = vector.broadcast %cst_25 : f32 to vector<31x8xf32>
    %51 = arith.subf %50, %49 : vector<31x8xf32>
    %52 = math.exp %51 : vector<31x8xf32>
    %cst_26 = arith.constant 1.000000e+00 : f32
    %53 = vector.broadcast %cst_26 : f32 to vector<31x8xf32>
    %54 = arith.addf %53, %52 : vector<31x8xf32>
    %55 = tpu.reciprocal %54 {approx = true} : vector<31x8xf32> -> vector<31x8xf32>
    %56 = arith.mulf %49, %55 : vector<31x8xf32>
    %57 = tpu.concatenate %12, %56, %12 in 0 : vector<7x8xf32>, vector<31x8xf32>, vector<7x8xf32> -> vector<45x8xf32>
    %58 = vector.extract_strided_slice %57 {offsets = [0, 0], sizes = [30, 8], strides = [1, 1]} : vector<45x8xf32> to vector<30x8xf32>
    %59 = vector.extract_strided_slice %57 {offsets = [1, 0], sizes = [30, 8], strides = [1, 1]} : vector<45x8xf32> to vector<30x8xf32>
    %60 = vector.extract_strided_slice %57 {offsets = [2, 0], sizes = [30, 8], strides = [1, 1]} : vector<45x8xf32> to vector<30x8xf32>
    %61 = vector.extract_strided_slice %57 {offsets = [3, 0], sizes = [30, 8], strides = [1, 1]} : vector<45x8xf32> to vector<30x8xf32>
    %62 = vector.extract_strided_slice %57 {offsets = [4, 0], sizes = [30, 8], strides = [1, 1]} : vector<45x8xf32> to vector<30x8xf32>
    %63 = vector.extract_strided_slice %57 {offsets = [5, 0], sizes = [30, 8], strides = [1, 1]} : vector<45x8xf32> to vector<30x8xf32>
    %64 = vector.extract_strided_slice %57 {offsets = [6, 0], sizes = [30, 8], strides = [1, 1]} : vector<45x8xf32> to vector<30x8xf32>
    %65 = vector.extract_strided_slice %57 {offsets = [7, 0], sizes = [30, 8], strides = [1, 1]} : vector<45x8xf32> to vector<30x8xf32>
    %66 = vector.extract_strided_slice %57 {offsets = [8, 0], sizes = [30, 8], strides = [1, 1]} : vector<45x8xf32> to vector<30x8xf32>
    %67 = vector.extract_strided_slice %57 {offsets = [9, 0], sizes = [30, 8], strides = [1, 1]} : vector<45x8xf32> to vector<30x8xf32>
    %68 = vector.extract_strided_slice %57 {offsets = [10, 0], sizes = [30, 8], strides = [1, 1]} : vector<45x8xf32> to vector<30x8xf32>
    %69 = vector.extract_strided_slice %57 {offsets = [11, 0], sizes = [30, 8], strides = [1, 1]} : vector<45x8xf32> to vector<30x8xf32>
    %70 = vector.extract_strided_slice %57 {offsets = [12, 0], sizes = [30, 8], strides = [1, 1]} : vector<45x8xf32> to vector<30x8xf32>
    %71 = vector.extract_strided_slice %57 {offsets = [13, 0], sizes = [30, 8], strides = [1, 1]} : vector<45x8xf32> to vector<30x8xf32>
    %72 = vector.extract_strided_slice %57 {offsets = [14, 0], sizes = [30, 8], strides = [1, 1]} : vector<45x8xf32> to vector<30x8xf32>
    %73 = vector.extract_strided_slice %57 {offsets = [15, 0], sizes = [30, 8], strides = [1, 1]} : vector<45x8xf32> to vector<30x8xf32>
    %74 = tpu.concatenate %58, %59, %60, %61, %62, %63, %64, %65, %66, %67, %68, %69, %70, %71, %72, %73 in 1 : vector<30x8xf32>, vector<30x8xf32>, vector<30x8xf32>, vector<30x8xf32>, vector<30x8xf32>, vector<30x8xf32>, vector<30x8xf32>, vector<30x8xf32>, vector<30x8xf32>, vector<30x8xf32>, vector<30x8xf32>, vector<30x8xf32>, vector<30x8xf32>, vector<30x8xf32>, vector<30x8xf32>, vector<30x8xf32> -> vector<30x128xf32>
    %75 = arith.truncf %74 : vector<30x128xf32> to vector<30x128xbf16>
    %cst_27 = arith.constant dense<0.000000e+00> : vector<30x8xf32>
    %76 = tpu.matmul %75, %8, %cst_27 {dimension_numbers = #tpu.dot_dimension_numbers<[1], [0], [0], [1], [0, 0, 1, 1], [], []>} : vector<30x128xbf16>, vector<128x8xbf16>, vector<30x8xf32> -> vector<30x8xf32>
    %77 = vector.broadcast %5 : vector<1x4xf32> to vector<32x4xf32>
    %78 = arith.mulf %14, %77 : vector<32x4xf32>
    %79 = vector.broadcast %6 : vector<1x4xf32> to vector<32x4xf32>
    %80 = arith.addf %78, %79 : vector<32x4xf32>
    %cst_28 = arith.constant 0.000000e+00 : f32
    %81 = vector.broadcast %cst_28 : f32 to vector<32x4xf32>
    %82 = arith.subf %81, %80 : vector<32x4xf32>
    %83 = math.exp %82 : vector<32x4xf32>
    %cst_29 = arith.constant 1.000000e+00 : f32
    %84 = vector.broadcast %cst_29 : f32 to vector<32x4xf32>
    %85 = arith.addf %84, %83 : vector<32x4xf32>
    %86 = tpu.reciprocal %85 {approx = true} : vector<32x4xf32> -> vector<32x4xf32>
    %87 = arith.mulf %80, %86 : vector<32x4xf32>
    %88 = arith.truncf %87 : vector<32x4xf32> to vector<32x4xbf16>
    %cst_30 = arith.constant dense<0.000000e+00> : vector<32x8xf32>
    %89 = tpu.matmul %88, %9, %cst_30 {dimension_numbers = #tpu.dot_dimension_numbers<[1], [0], [0], [1], [0, 0, 1, 1], [], []>} : vector<32x4xbf16>, vector<4x8xbf16>, vector<32x8xf32> -> vector<32x8xf32>
    %90 = vector.extract_strided_slice %76 {offsets = [0, 0], sizes = [1, 8], strides = [1, 1]} : vector<30x8xf32> to vector<1x8xf32>
    %91 = vector.extract_strided_slice %76 {offsets = [29, 0], sizes = [1, 8], strides = [1, 1]} : vector<30x8xf32> to vector<1x8xf32>
    %92 = tpu.concatenate %90, %76, %91 in 0 : vector<1x8xf32>, vector<30x8xf32>, vector<1x8xf32> -> vector<32x8xf32>
    %93 = arith.addf %92, %89 : vector<32x8xf32>
    %94 = vector.broadcast %10 : vector<1x8xf32> to vector<32x8xf32>
    %95 = arith.addf %93, %94 : vector<32x8xf32>
    %96 = vector.extract_strided_slice %0 {offsets = [1, 0, 0], sizes = [1, 32, 4], strides = [1, 1, 1]} : vector<2x32x4xf32> to vector<1x32x4xf32>
    %97 = vector.shape_cast %96 : vector<1x32x4xf32> to vector<32x4xf32>
    %98 = vector.broadcast %1 : vector<1x4xf32> to vector<32x4xf32>
    %99 = arith.mulf %97, %98 : vector<32x4xf32>
    %100 = vector.broadcast %2 : vector<1x4xf32> to vector<32x4xf32>
    %101 = arith.addf %99, %100 : vector<32x4xf32>
    %cst_31 = arith.constant 0.000000e+00 : f32
    %102 = vector.broadcast %cst_31 : f32 to vector<32x4xf32>
    %103 = arith.subf %102, %101 : vector<32x4xf32>
    %104 = math.exp %103 : vector<32x4xf32>
    %cst_32 = arith.constant 1.000000e+00 : f32
    %105 = vector.broadcast %cst_32 : f32 to vector<32x4xf32>
    %106 = arith.addf %105, %104 : vector<32x4xf32>
    %107 = tpu.reciprocal %106 {approx = true} : vector<32x4xf32> -> vector<32x4xf32>
    %108 = arith.mulf %101, %107 : vector<32x4xf32>
    %109 = tpu.concatenate %11, %108, %11 in 0 : vector<7x4xf32>, vector<32x4xf32>, vector<7x4xf32> -> vector<46x4xf32>
    %110 = vector.extract_strided_slice %109 {offsets = [0, 0], sizes = [31, 4], strides = [1, 1]} : vector<46x4xf32> to vector<31x4xf32>
    %111 = vector.extract_strided_slice %109 {offsets = [1, 0], sizes = [31, 4], strides = [1, 1]} : vector<46x4xf32> to vector<31x4xf32>
    %112 = vector.extract_strided_slice %109 {offsets = [2, 0], sizes = [31, 4], strides = [1, 1]} : vector<46x4xf32> to vector<31x4xf32>
    %113 = vector.extract_strided_slice %109 {offsets = [3, 0], sizes = [31, 4], strides = [1, 1]} : vector<46x4xf32> to vector<31x4xf32>
    %114 = vector.extract_strided_slice %109 {offsets = [4, 0], sizes = [31, 4], strides = [1, 1]} : vector<46x4xf32> to vector<31x4xf32>
    %115 = vector.extract_strided_slice %109 {offsets = [5, 0], sizes = [31, 4], strides = [1, 1]} : vector<46x4xf32> to vector<31x4xf32>
    %116 = vector.extract_strided_slice %109 {offsets = [6, 0], sizes = [31, 4], strides = [1, 1]} : vector<46x4xf32> to vector<31x4xf32>
    %117 = vector.extract_strided_slice %109 {offsets = [7, 0], sizes = [31, 4], strides = [1, 1]} : vector<46x4xf32> to vector<31x4xf32>
    %118 = vector.extract_strided_slice %109 {offsets = [8, 0], sizes = [31, 4], strides = [1, 1]} : vector<46x4xf32> to vector<31x4xf32>
    %119 = vector.extract_strided_slice %109 {offsets = [9, 0], sizes = [31, 4], strides = [1, 1]} : vector<46x4xf32> to vector<31x4xf32>
    %120 = vector.extract_strided_slice %109 {offsets = [10, 0], sizes = [31, 4], strides = [1, 1]} : vector<46x4xf32> to vector<31x4xf32>
    %121 = vector.extract_strided_slice %109 {offsets = [11, 0], sizes = [31, 4], strides = [1, 1]} : vector<46x4xf32> to vector<31x4xf32>
    %122 = vector.extract_strided_slice %109 {offsets = [12, 0], sizes = [31, 4], strides = [1, 1]} : vector<46x4xf32> to vector<31x4xf32>
    %123 = vector.extract_strided_slice %109 {offsets = [13, 0], sizes = [31, 4], strides = [1, 1]} : vector<46x4xf32> to vector<31x4xf32>
    %124 = vector.extract_strided_slice %109 {offsets = [14, 0], sizes = [31, 4], strides = [1, 1]} : vector<46x4xf32> to vector<31x4xf32>
    %125 = vector.extract_strided_slice %109 {offsets = [15, 0], sizes = [31, 4], strides = [1, 1]} : vector<46x4xf32> to vector<31x4xf32>
    %126 = tpu.concatenate %110, %111, %112, %113, %114, %115, %116, %117, %118, %119, %120, %121, %122, %123, %124, %125 in 1 : vector<31x4xf32>, vector<31x4xf32>, vector<31x4xf32>, vector<31x4xf32>, vector<31x4xf32>, vector<31x4xf32>, vector<31x4xf32>, vector<31x4xf32>, vector<31x4xf32>, vector<31x4xf32>, vector<31x4xf32>, vector<31x4xf32>, vector<31x4xf32>, vector<31x4xf32>, vector<31x4xf32>, vector<31x4xf32> -> vector<31x64xf32>
    %127 = arith.truncf %126 : vector<31x64xf32> to vector<31x64xbf16>
    %cst_33 = arith.constant dense<0.000000e+00> : vector<31x8xf32>
    %128 = tpu.matmul %127, %7, %cst_33 {dimension_numbers = #tpu.dot_dimension_numbers<[1], [0], [0], [1], [0, 0, 1, 1], [], []>} : vector<31x64xbf16>, vector<64x8xbf16>, vector<31x8xf32> -> vector<31x8xf32>
    %129 = vector.broadcast %3 : vector<1x8xf32> to vector<31x8xf32>
    %130 = arith.mulf %128, %129 : vector<31x8xf32>
    %131 = vector.broadcast %4 : vector<1x8xf32> to vector<31x8xf32>
    %132 = arith.addf %130, %131 : vector<31x8xf32>
    %cst_34 = arith.constant 0.000000e+00 : f32
    %133 = vector.broadcast %cst_34 : f32 to vector<31x8xf32>
    %134 = arith.subf %133, %132 : vector<31x8xf32>
    %135 = math.exp %134 : vector<31x8xf32>
    %cst_35 = arith.constant 1.000000e+00 : f32
    %136 = vector.broadcast %cst_35 : f32 to vector<31x8xf32>
    %137 = arith.addf %136, %135 : vector<31x8xf32>
    %138 = tpu.reciprocal %137 {approx = true} : vector<31x8xf32> -> vector<31x8xf32>
    %139 = arith.mulf %132, %138 : vector<31x8xf32>
    %140 = tpu.concatenate %12, %139, %12 in 0 : vector<7x8xf32>, vector<31x8xf32>, vector<7x8xf32> -> vector<45x8xf32>
    %141 = vector.extract_strided_slice %140 {offsets = [0, 0], sizes = [30, 8], strides = [1, 1]} : vector<45x8xf32> to vector<30x8xf32>
    %142 = vector.extract_strided_slice %140 {offsets = [1, 0], sizes = [30, 8], strides = [1, 1]} : vector<45x8xf32> to vector<30x8xf32>
    %143 = vector.extract_strided_slice %140 {offsets = [2, 0], sizes = [30, 8], strides = [1, 1]} : vector<45x8xf32> to vector<30x8xf32>
    %144 = vector.extract_strided_slice %140 {offsets = [3, 0], sizes = [30, 8], strides = [1, 1]} : vector<45x8xf32> to vector<30x8xf32>
    %145 = vector.extract_strided_slice %140 {offsets = [4, 0], sizes = [30, 8], strides = [1, 1]} : vector<45x8xf32> to vector<30x8xf32>
    %146 = vector.extract_strided_slice %140 {offsets = [5, 0], sizes = [30, 8], strides = [1, 1]} : vector<45x8xf32> to vector<30x8xf32>
    %147 = vector.extract_strided_slice %140 {offsets = [6, 0], sizes = [30, 8], strides = [1, 1]} : vector<45x8xf32> to vector<30x8xf32>
    %148 = vector.extract_strided_slice %140 {offsets = [7, 0], sizes = [30, 8], strides = [1, 1]} : vector<45x8xf32> to vector<30x8xf32>
    %149 = vector.extract_strided_slice %140 {offsets = [8, 0], sizes = [30, 8], strides = [1, 1]} : vector<45x8xf32> to vector<30x8xf32>
    %150 = vector.extract_strided_slice %140 {offsets = [9, 0], sizes = [30, 8], strides = [1, 1]} : vector<45x8xf32> to vector<30x8xf32>
    %151 = vector.extract_strided_slice %140 {offsets = [10, 0], sizes = [30, 8], strides = [1, 1]} : vector<45x8xf32> to vector<30x8xf32>
    %152 = vector.extract_strided_slice %140 {offsets = [11, 0], sizes = [30, 8], strides = [1, 1]} : vector<45x8xf32> to vector<30x8xf32>
    %153 = vector.extract_strided_slice %140 {offsets = [12, 0], sizes = [30, 8], strides = [1, 1]} : vector<45x8xf32> to vector<30x8xf32>
    %154 = vector.extract_strided_slice %140 {offsets = [13, 0], sizes = [30, 8], strides = [1, 1]} : vector<45x8xf32> to vector<30x8xf32>
    %155 = vector.extract_strided_slice %140 {offsets = [14, 0], sizes = [30, 8], strides = [1, 1]} : vector<45x8xf32> to vector<30x8xf32>
    %156 = vector.extract_strided_slice %140 {offsets = [15, 0], sizes = [30, 8], strides = [1, 1]} : vector<45x8xf32> to vector<30x8xf32>
    %157 = tpu.concatenate %141, %142, %143, %144, %145, %146, %147, %148, %149, %150, %151, %152, %153, %154, %155, %156 in 1 : vector<30x8xf32>, vector<30x8xf32>, vector<30x8xf32>, vector<30x8xf32>, vector<30x8xf32>, vector<30x8xf32>, vector<30x8xf32>, vector<30x8xf32>, vector<30x8xf32>, vector<30x8xf32>, vector<30x8xf32>, vector<30x8xf32>, vector<30x8xf32>, vector<30x8xf32>, vector<30x8xf32>, vector<30x8xf32> -> vector<30x128xf32>
    %158 = arith.truncf %157 : vector<30x128xf32> to vector<30x128xbf16>
    %cst_36 = arith.constant dense<0.000000e+00> : vector<30x8xf32>
    %159 = tpu.matmul %158, %8, %cst_36 {dimension_numbers = #tpu.dot_dimension_numbers<[1], [0], [0], [1], [0, 0, 1, 1], [], []>} : vector<30x128xbf16>, vector<128x8xbf16>, vector<30x8xf32> -> vector<30x8xf32>
    %160 = vector.broadcast %5 : vector<1x4xf32> to vector<32x4xf32>
    %161 = arith.mulf %97, %160 : vector<32x4xf32>
    %162 = vector.broadcast %6 : vector<1x4xf32> to vector<32x4xf32>
    %163 = arith.addf %161, %162 : vector<32x4xf32>
    %cst_37 = arith.constant 0.000000e+00 : f32
    %164 = vector.broadcast %cst_37 : f32 to vector<32x4xf32>
    %165 = arith.subf %164, %163 : vector<32x4xf32>
    %166 = math.exp %165 : vector<32x4xf32>
    %cst_38 = arith.constant 1.000000e+00 : f32
    %167 = vector.broadcast %cst_38 : f32 to vector<32x4xf32>
    %168 = arith.addf %167, %166 : vector<32x4xf32>
    %169 = tpu.reciprocal %168 {approx = true} : vector<32x4xf32> -> vector<32x4xf32>
    %170 = arith.mulf %163, %169 : vector<32x4xf32>
    %171 = arith.truncf %170 : vector<32x4xf32> to vector<32x4xbf16>
    %cst_39 = arith.constant dense<0.000000e+00> : vector<32x8xf32>
    %172 = tpu.matmul %171, %9, %cst_39 {dimension_numbers = #tpu.dot_dimension_numbers<[1], [0], [0], [1], [0, 0, 1, 1], [], []>} : vector<32x4xbf16>, vector<4x8xbf16>, vector<32x8xf32> -> vector<32x8xf32>
    %173 = vector.extract_strided_slice %159 {offsets = [0, 0], sizes = [1, 8], strides = [1, 1]} : vector<30x8xf32> to vector<1x8xf32>
    %174 = vector.extract_strided_slice %159 {offsets = [29, 0], sizes = [1, 8], strides = [1, 1]} : vector<30x8xf32> to vector<1x8xf32>
    %175 = tpu.concatenate %173, %159, %174 in 0 : vector<1x8xf32>, vector<30x8xf32>, vector<1x8xf32> -> vector<32x8xf32>
    %176 = arith.addf %175, %172 : vector<32x8xf32>
    %177 = vector.broadcast %10 : vector<1x8xf32> to vector<32x8xf32>
    %178 = arith.addf %176, %177 : vector<32x8xf32>
    %179 = vector.shape_cast %95 : vector<32x8xf32> to vector<1x32x8xf32>
    %180 = vector.shape_cast %178 : vector<32x8xf32> to vector<1x32x8xf32>
    %181 = tpu.concatenate %179, %180 in 0 : vector<1x32x8xf32>, vector<1x32x8xf32> -> vector<2x32x8xf32>
    %c0_40 = arith.constant 0 : index
    %c0_41 = arith.constant 0 : index
    %c0_42 = arith.constant 0 : index
    %182 = vector.load %arg9[%c0_40, %c0_41, %c0_42] : memref<2x32x8xf32, #tpu.memory_space<vmem>>, vector<2x32x8xf32>
    tpu.vector_store %arg9[%c0_40, %c0_41, %c0_42], %181 {strides = array<i32>} : memref<2x32x8xf32, #tpu.memory_space<vmem>>, vector<2x32x8xf32>,
    return
  }
  func.func @transform_0(%arg0: i32) -> (i32, i32, i32) {
    %c0_i32 = arith.constant 0 : i32
    %c0_i32_0 = arith.constant 0 : i32
    %c0_i32_1 = arith.constant 0 : i32
    return %arg0, %c0_i32, %c0_i32_0 : i32, i32, i32
  }
  func.func @transform_1(%arg0: i32) -> (i32, i32) {
    %c0_i32 = arith.constant 0 : i32
    %c0_i32_0 = arith.constant 0 : i32
    %c0_i32_1 = arith.constant 0 : i32
    return %c0_i32, %c0_i32_0 : i32, i32
  }
  func.func @transform_2(%arg0: i32) -> (i32, i32) {
    %c0_i32 = arith.constant 0 : i32
    %c0_i32_0 = arith.constant 0 : i32
    %c0_i32_1 = arith.constant 0 : i32
    return %c0_i32, %c0_i32_0 : i32, i32
  }
  func.func @transform_3(%arg0: i32) -> (i32, i32) {
    %c0_i32 = arith.constant 0 : i32
    %c0_i32_0 = arith.constant 0 : i32
    %c0_i32_1 = arith.constant 0 : i32
    return %c0_i32, %c0_i32_0 : i32, i32
  }
  func.func @transform_4(%arg0: i32) -> (i32, i32) {
    %c0_i32 = arith.constant 0 : i32
    %c0_i32_0 = arith.constant 0 : i32
    %c0_i32_1 = arith.constant 0 : i32
    return %c0_i32, %c0_i32_0 : i32, i32
  }
  func.func @transform_5(%arg0: i32) -> (i32, i32) {
    %c0_i32 = arith.constant 0 : i32
    %c0_i32_0 = arith.constant 0 : i32
    %c0_i32_1 = arith.constant 0 : i32
    return %c0_i32, %c0_i32_0 : i32, i32
  }
  func.func @transform_6(%arg0: i32) -> (i32, i32) {
    %c0_i32 = arith.constant 0 : i32
    %c0_i32_0 = arith.constant 0 : i32
    %c0_i32_1 = arith.constant 0 : i32
    return %c0_i32, %c0_i32_0 : i32, i32
  }
  func.func @transform_7(%arg0: i32) -> (i32, i32) {
    %c0_i32 = arith.constant 0 : i32
    %c0_i32_0 = arith.constant 0 : i32
    %c0_i32_1 = arith.constant 0 : i32
    return %c0_i32, %c0_i32_0 : i32, i32
  }
  func.func @transform_8(%arg0: i32) -> (i32, i32, i32) {
    %c0_i32 = arith.constant 0 : i32
    %c0_i32_0 = arith.constant 0 : i32
    %c0_i32_1 = arith.constant 0 : i32
    return %arg0, %c0_i32, %c0_i32_0 : i32, i32, i32
  }
}

</mosaic_0001>

<bundles_post_ra>
// kernel: my_conv1d_pad_same_dual.1
= control target key start
LH: loop header
LB: loop body
LE: loop exit
PB: predicated region body
PF: predicated region fallthrough
CT: control target
= control target key end

     0   :  { %s3434_s27 = smov 0   ;;  %s5177_s0 = inlined_call_operand.vmem [shape: f32[4,32,4], index: 0, kind: input, shape index: {}]   ;;  %s5178_s1 = inlined_call_operand.vmem [shape: f32[2,4], index: 1, kind: input, shape index: {}]   ;;  %s5179_s2 = inlined_call_operand.vmem [shape: bf16[64,8], index: 2, kind: input, shape index: {}]   ;;  %s5180_s3 = inlined_call_operand.vmem [shape: f32[2,8], index: 3, kind: input, shape index: {}]   ;;  %s5181_s4 = inlined_call_operand.vmem [shape: bf16[128,8], index: 4, kind: input, shape index: {}]   ;;  %s5182_s5 = inlined_call_operand.vmem [shape: f32[2,4], index: 5, kind: input, shape index: {}]   ;;  %s5183_s6 = inlined_call_operand.vmem [shape: bf16[4,8], index: 6, kind: input, shape index: {}]   ;;  %s5184_s7 = inlined_call_operand.vmem [shape: f32[1,8], index: 7, kind: input, shape index: {}]   ;;  %s5185_s8 = inlined_call_operand.vmem [shape: f32[4,32,8], index: 8, kind: output, shape index: {}]  }
   0x1 LB: > { %s2453_s28 = sadd.s32 4294967295, %s3363_s27   ;;  %p2457_p0 = scmp.ge.s32.totalorder %s3363_s27, 1  ;;  %s3363_s27 = sphi %s3434_s27, %s18_s27  }
   0x2   : > { %p264_p1 = scmp.lt.s32.totalorder %s3363_s27, 3 }
   0x4   : > { %p265_p2 = pnand %p2457_p0, %p264_p1 }
   0x5   : > { %s2458_s29 = sshll.u32 (!%p265_p2), %s2453_s28, 1  ;;  %v2464_v0 = vld [vmem:[%s5178_s1] ss:$0 sm:$0xff] (!%p265_p2)  ;;  %v2465_v1 = vld [vmem:[%s5178_s1 + $0x1] ss:$0 sm:$0xff] (!%p265_p2)  ;;  %vm5191_vm0 = vcmask (!%p265_p2), 1046528  }
   0x6   : > { %268 = sbr.rel (%p265_p2) target bundleno = 951 (0x3b7), region = 52  ;;  %p301_p3 = scmp.lt.s32.totalorder (!%p265_p2), %s2458_s29, 3  ;;  %vm5190_vm1 = vcmask (!%p265_p2), 1045504   ;;  %vm5189_vm2 = vcmask (!%p265_p2), 1044480   ;;  %vm5188_vm3 = vcmask (!%p265_p2), 1043456   ;;  %vm5187_vm4 = vcmask (!%p265_p2), 1042432  }
   0x7   : > { %s3365_s16 = smov (!%p265_p2), 32   ;;  %s3366_s17 = smov (!%p265_p2), 8   ;;  %vm523_vm5 = vcmask (!%p265_p2), 1041408   ;;  %vm5186_vm6 = vcmask (!%p265_p2), 1040384   ;;  %vm678_vm7 = vcmask (!%p265_p2), 31744   ;;  %vm683_vm8 = vcmask (!%p265_p2), 64512  }
   0x8   : > { %s3367_s18 = smov (!%p265_p2), 4   ;;  %s3368_s19 = smov (!%p265_p2), 12   ;;  %vm688_vm9 = vcmask (!%p265_p2), 97280   ;;  %vm693_vm10 = vcmask (!%p265_p2), 130048   ;;  %vm698_vm11 = vcmask (!%p265_p2), 162816   ;;  %vm703_vm12 = vcmask (!%p265_p2), 195584  }
   0x9   : > { %s3369_s20 = smov (!%p265_p2), 16   ;;  %s3370_s21 = smov (!%p265_p2), 20   ;;  %vm708_vm13 = vcmask (!%p265_p2), 228352   ;;  %vm713_vm14 = vcmask (!%p265_p2), 261120   ;;  %vm718_vm15 = vcmask (!%p265_p2), 293888  }
   0xa   : > { %s3371_s22 = smov (!%p265_p2), 24   ;;  %s3373_s23 = smov (!%p265_p2), 28  }
   0xb   : > { %s3374_s24 = smov (!%p265_p2), 36   ;;  %s3375_s28 = smov (!%p265_p2), 40  }
   0xc   : > { %s3376_s11 = smov (!%p265_p2), 44   ;;  %s3377_s15 = smov (!%p265_p2), 48  }
   0xd   : > { %s5270_s29 = smov (!%p301_p3, %s2458_s29), 3  ;;  %s3378_s30 = smov 52  }
   0xe   : > { %s5193_s10 = sshll.u32 %s5270_s29, 5  ;;  %s3379_s9 = smov 56  }
   0xf   : > { %s3453_s13 = scalar_lea.vmem %s5177_s0, %s5193_s10  ;;  %s3380_s12 = smov 60  }
  0x10   : > { %v3459_v2 = vld [vmem:[%s3453_s13 + $0x10] sm:$0xff]  ;;  %v3462_v3 = vld [vmem:[%s3453_s13 + $0x18] sm:$0xff]  ;;  %v3465_v4 = vld [vmem:[%s3453_s13] sm:$0xff]  ;;  %s3387_s14 = smov 112   ;;  %s3388_s26 = smov 120  }
  0x11   : > { %v361_v5 = vmul.f32 %v2464_v0, %v3459_v2  ;;  %v362_v6 = vmul.f32 %v2464_v0, %v3462_v3  ;;  %v3470_v7 = vld [vmem:[%s3453_s13 + $0x8] sm:$0xff]  ;;  %v359_v8 = vmul.f32 %v2464_v0, %v3465_v4  ;;  %v321_v23 = vld [vmem:[%s3453_s13 + $0x30] sm:$0xff]  ;;  %v322_v25 = vld [vmem:[%s3453_s13 + $0x38] sm:$0xff] }
  0x12   : > { %v360_v9 = vmul.f32 %v2464_v0, %v3470_v7  ;;  %v320_v22 = vld [vmem:[%s3453_s13 + $0x28] sm:$0xff]  ;;  %v1444_v31 = vmul.f32 %v2464_v0, %v321_v23  ;;  %v1445_v34 = vmul.f32 %v2464_v0, %v322_v25  ;;  %v319_v35 = vld [vmem:[%s3453_s13 + $0x20] sm:$0xff] }
  0x13   : > { %v369_v10 = vadd.f32 %v2465_v1, %v361_v5  ;;  %v370_v11 = vadd.f32 %v2465_v1, %v362_v6  ;;  %v367_v12 = vadd.f32 %v2465_v1, %v359_v8  ;;  %v1443_v28 = vmul.f32 %v2464_v0, %v320_v22 }
  0x14   : > { %v368_v13 = vadd.f32 %v2465_v1, %v360_v9  ;;  %v3480_v38 = vadd.f32 %v2465_v1, %v1444_v31  ;;  %v1442_v39 = vmul.f32 %v2464_v0, %v319_v35  ;;  %v3482_v40 = vadd.f32 %v2465_v1, %v1445_v34 }
  0x15   : > { %v373_v14 = vsub.f32 0.0, %v369_v10  ;;  %v374_v15 = vsub.f32 0.0, %v370_v11  ;;  %v371_v16 = vsub.f32 0.0, %v367_v12  ;;  %v3478_v37 = vadd.f32 %v2465_v1, %v1443_v28 }
  0x16   : > { %v372_v17 = vsub.f32 0.0, %v368_v13  ;;  %v1452_v42 = vsub.f32 0.0, %v3480_v38  ;;  %v3486_v43 = vadd.f32 %v2465_v1, %v1442_v39  ;;  %v1453_v44 = vsub.f32 0.0, %v3482_v40 }
  0x17   : > { %v379_v18 = vmul.f32 1.442695, %v373_v14  ;;  %v381_v19 = vmul.f32 1.442695, %v374_v15  ;;  %v375_v20 = vmul.f32 1.442695, %v371_v16 }
  0x18   : > { %v377_v21 = vmul.f32 1.442695, %v372_v17  ;;  %v1451_v41 = vsub.f32 0.0, %v3478_v37  ;;  %v1458_v49 = vmul.f32 1.442695, %v1452_v42  ;;  %v1450_v50 = vsub.f32 0.0, %v3486_v43 }
  0x19   : > { %3255 = vpow2.f32 %v379_v18  ;;  %v1460_v53 = vmul.f32 1.442695, %v1453_v44 }
  0x1a   : > { %3257 = vpow2.f32 %v381_v19  ;;  %v1456_v46 = vmul.f32 1.442695, %v1451_v41  ;;  %v1454_v60 = vmul.f32 1.442695, %v1450_v50 }
  0x1b   : > { %3259 = vpow2.f32 %v375_v20 }
  0x1c   : > { %3261 = vpow2.f32 %v377_v21 }
  0x23   : > { %v3256_v24 = vpop.eup %3255 }
  0x24   : > { %v3258_v26 = vpop.eup %3257  ;;  %v385_v27 = vadd.f32 1.0, %v3256_v24 }
  0x25   : > { %v3260_v29 = vpop.eup %3259  ;;  %v386_v30 = vadd.f32 1.0, %v3258_v26 }
  0x26   : > { %v3262_v32 = vpop.eup %3261  ;;  %3263 = vrcp.f32 %v385_v27  ;;  %v383_v33 = vadd.f32 1.0, %v3260_v29 }
  0x27   : > { %3265 = vrcp.f32 %v386_v30  ;;  %v384_v36 = vadd.f32 1.0, %v3262_v32 }
  0x28   : > { %3267 = vrcp.f32 %v383_v33 }
  0x29   : > { %3269 = vrcp.f32 %v384_v36 }
  0x2a   : > { %3271 = vpow2.f32 %v1456_v46 }
  0x2b   : > { %3273 = vpow2.f32 %v1458_v49 }
  0x2c   : > { %3275 = vpow2.f32 %v1460_v53 }
  0x2d   : > { %3277 = vpow2.f32 %v1454_v60 }
  0x30   : > { %v3264_v45 = vpop.eup %3263 }
  0x31   : > { %v3266_v47 = vpop.eup %3265  ;;  %v393_v48 = vmul.f32 %v3264_v45, %v369_v10 }
  0x32   : > { %v3268_v51 = vpop.eup %3267  ;;  %v394_v52 = vmul.f32 %v3266_v47, %v370_v11 }
  0x33   : > { %v3270_v54 = vpop.eup %3269  ;;  %v403_v55 = vrot.slane %v393_v48, 1  ;;  %v391_v56 = vmul.f32 %v3268_v51, %v367_v12 }
  0x34   : > { %v405_v57 = vrot.slane %v394_v52, 1  ;;  %v392_v58 = vmul.f32 %v3270_v54, %v368_v13  ;;  %v3551_v32 = vpop.eup %3271 }
  0x35   : > { %v400_v59 = vrot.slane %v391_v56, 1  ;;  %v3274_v39 = vpop.eup %3273 }
  0x36   : > { %v3491_v61 = vsel %vm5191_vm0, %v403_v55, %v405_v57  ;;  %v3494_v62 = vsel %vm5191_vm0, %v405_v57, 0.0  ;;  %v401_v63 = vrot.slane %v392_v58, 1  ;;  %v3276_v46 = vpop.eup %3275 }
  0x37   : > { %v2648_v0 = vpack.i.bf16 %v3494_v62, %v3491_v61  ;;  %v3499_v1 = vsel %vm5191_vm0, 0.0, %v400_v59  ;;  %v441_v5 = vrot.slane %v3491_v61, 2  ;;  %v443_v6 = vrot.slane %v3494_v62, 2 }
  0x38   : > { %v3504_v8 = vsel %vm5191_vm0, %v400_v59, %v401_v63  ;;  %v3507_v9 = vsel %vm5191_vm0, %v401_v63, %v403_v55  ;;  %v436_v10 = vrot.slane %v3499_v1, 2  ;;  %v415_v11 = vrot.slane %v3499_v1, 1 }
  0x39   : > { %2649 = vrot.lane.b32.xlu1 %v2648_v0, %s3365_s16  ;;  %v2643_v12 = vpack.i.bf16 %v3507_v9, %v3504_v8  ;;  %v437_v13 = vrot.slane %v3504_v8, 2  ;;  %v439_v14 = vrot.slane %v3507_v9, 2  ;;  %v416_v15 = vrot.slane %v3504_v8, 1 }
  0x3a   : > { %v418_v16 = vrot.slane %v3507_v9, 1  ;;  %v3521_v17 = vsel %vm5190_vm1, %v441_v5, %v443_v6  ;;  %v3524_v18 = vrot.slane %v3491_v61, 1  ;;  %v461_v19 = vrot.slane %v3507_v9, 3 }
  0x3b   : > { %2644 = vrot.lane.b32.xlu0 %v2643_v12, %s3365_s16  ;;  %v438_v20 = vsel %vm5190_vm1, %v436_v10, %v437_v13  ;;  %v3530_v21 = vsel %vm5190_vm1, %v437_v13, %v439_v14  ;;  %v417_v22 = vsel %vm5191_vm0, %v415_v11, %v416_v15  ;;  %v3534_v23 = vsel %vm5190_vm1, %v439_v14, %v441_v5 }
  0x3c   : > { %v2663_v24 = vpack.i.bf16 %v3530_v21, %v438_v20  ;;  %v3538_v25 = vsel %vm5191_vm0, %v416_v15, %v418_v16  ;;  %v2668_v26 = vpack.i.bf16 %v3521_v17, %v3534_v23  ;;  %v3544_v27 = vsel %vm5191_vm0, %v418_v16, %v3524_v18  ;;  %v3278_v20 = vpop.eup %3277 }
  0x3d   : > { %v2653_v28 = vpack.i.bf16 %v3538_v25, %v417_v22  ;;  %v2658_v29 = vpack.i.bf16 %v3524_v18, %v3544_v27  ;;  %v463_v30 = vrot.slane %v3491_v61, 3  ;;  %v465_v31 = vrot.slane %v3494_v62, 3 }
  0x3e   : > { %2664 = vrot.lane.b32.xlu1 %v2663_v24, %s3366_s17  ;;  %v458_v33 = vrot.slane %v3499_v1, 3  ;;  %v459_v34 = vrot.slane %v3504_v8, 3  ;;  %v483_v35 = vrot.slane %v3507_v9, 4  ;;  %v485_v36 = vrot.slane %v3491_v61, 4 }
  0x3f   : > { %2654 = vrot.lane.b32.xlu0 %v2653_v28, %s3367_s18  ;;  %v3560_v41 = vsel %vm5189_vm2, %v461_v19, %v463_v30  ;;  %v3565_v42 = vsel %vm5189_vm2, %v463_v30, %v465_v31  ;;  %v487_v44 = vrot.slane %v3494_v62, 4  ;;  %v480_v45 = vrot.slane %v3499_v1, 4 }
  0x40   : > { %v460_v47 = vsel %vm5189_vm2, %v458_v33, %v459_v34  ;;  %v3571_v48 = vsel %vm5189_vm2, %v459_v34, %v461_v19  ;;  %v2678_v49 = vpack.i.bf16 %v3565_v42, %v3560_v41  ;;  %v3577_v51 = vsel %vm5188_vm3, %v483_v35, %v485_v36 }
  0x41   : > { %v2673_v50 = vpack.i.bf16 %v3571_v48, %v460_v47  ;;  %v481_v52 = vrot.slane %v3504_v8, 4  ;;  %v3584_v53 = vsel %vm5188_vm3, %v485_v36, %v487_v44  ;;  %v505_v54 = vrot.slane %v3507_v9, 5 }
  0x42   : > { %2669 = vrot.lane.b32.xlu1 %v2668_v26, %s3366_s17  ;;  %v507_v55 = vrot.slane %v3491_v61, 5  ;;  %v509_v56 = vrot.slane %v3494_v62, 5  ;;  %v502_v59 = vrot.slane %v3499_v1, 5  ;;  %v503_v60 = vrot.slane %v3504_v8, 5 }
  0x43   : > { %2659 = vrot.lane.b32.xlu0 %v2658_v29, %s3367_s18  ;;  %v482_v57 = vsel %vm5188_vm3, %v480_v45, %v481_v52  ;;  %v3592_v58 = vsel %vm5188_vm3, %v481_v52, %v483_v35  ;;  %v2688_v63 = vpack.i.bf16 %v3584_v53, %v3577_v51  ;;  %v527_v10 = vrot.slane %v3507_v9, 6 }
  0x44   : > { %v2683_v0 = vpack.i.bf16 %v3592_v58, %v482_v57  ;;  %v3601_v5 = vsel %vm5187_vm4, %v505_v54, %v507_v55  ;;  %v529_v11 = vrot.slane %v3491_v61, 6  ;;  %v3609_v12 = vsel %vm5187_vm4, %v507_v55, %v509_v56 }
  0x45   : > { %v504_v13 = vsel %vm5187_vm4, %v502_v59, %v503_v60  ;;  %v3613_v14 = vsel %vm5187_vm4, %v503_v60, %v505_v54  ;;  %v531_v15 = vrot.slane %v3494_v62, 6  ;;  %v524_v16 = vrot.slane %v3499_v1, 6 }
  0x46   : > { %2679 = vrot.lane.b32.xlu1 %v2678_v49, %s3368_s19  ;;  %v525_v19 = vrot.slane %v3504_v8, 6  ;;  %v2698_v22 = vpack.i.bf16 %v3609_v12, %v3601_v5  ;;  %v2693_v24 = vpack.i.bf16 %v3613_v14, %v504_v13  ;;  %v3623_v26 = vsel %vm523_vm5, %v527_v10, %v529_v11 }
  0x47   : > { %2674 = vrot.lane.b32.xlu0 %v2673_v50, %s3368_s19  ;;  %v3629_v28 = vsel %vm523_vm5, %v529_v11, %v531_v15  ;;  %v549_v29 = vrot.slane %v3507_v9, 7  ;;  %v551_v30 = vrot.slane %v3491_v61, 7  ;;  %v553_v33 = vrot.slane %v3494_v62, 7 }
  0x48   : > { %v526_v34 = vsel %vm523_vm5, %v524_v16, %v525_v19  ;;  %v3636_v35 = vsel %vm523_vm5, %v525_v19, %v527_v10  ;;  %v546_v36 = vrot.slane %v3499_v1, 7  ;;  %v547_v45 = vrot.slane %v3504_v8, 7 }
  0x49   : > { %v1463_v47 = vadd.f32 1.0, %v3551_v32  ;;  %v2708_v49 = vpack.i.bf16 %v3629_v28, %v3623_v26  ;;  %v1464_v50 = vadd.f32 1.0, %v3274_v39  ;;  %v1465_v52 = vadd.f32 1.0, %v3276_v46 }
  0x4a   : > { %2689 = vrot.lane.b32.xlu1 %v2688_v63, %s3369_s20  ;;  %v2703_v54 = vpack.i.bf16 %v3636_v35, %v526_v34  ;;  %v3647_v55 = vsel %vm5186_vm6, %v549_v29, %v551_v30  ;;  %v3652_v57 = vsel %vm5186_vm6, %v551_v30, %v553_v33  ;;  %v579_v32 = vrot.slane %v3494_v62, 1 }
  0x4b   : > { %2684 = vrot.lane.b32.xlu0 %v2683_v0, %s3369_s20  ;;  %v548_v59 = vsel %vm5186_vm6, %v546_v36, %v547_v45  ;;  %v3657_v60 = vsel %vm5186_vm6, %v547_v45, %v549_v29  ;;  %v1462_v39 = vadd.f32 1.0, %v3278_v20  ;;  %3279 = vrcp.f32 %v1463_v47 }
  0x4c   : > { %v2718_v46 = vpack.i.bf16 %v3652_v57, %v3647_v55  ;;  %3281 = vrcp.f32 %v1464_v50  ;;  %v2713_v63 = vpack.i.bf16 %v3657_v60, %v548_v59  ;;  %v580_v0 = vsel %vm5191_vm0, %v3524_v18, %v579_v32 }
  0x4d   : > { %v3372_v10 = vmov 0.0   ;;  %3283 = vrcp.f32 %v1465_v52  ;;  %v2728_v13 = vpack.i.bf16 %v579_v32, %v580_v0  ;;  %v2723_v16 = vpack.i.bf16 %v3544_v27, %v3538_v25 }
  0x4e   : > { %2699 = vrot.lane.b32.xlu1 %v2698_v22, %s3370_s21  ;;  %v3666_v11 = vrot.slane %v3372_v10, 2  ;;  %3285 = vrcp.f32 %v1462_v39  ;;  %v3676_v18 = vrot.slane %v3372_v10, 3  ;;  %v3683_v22 = vld [vmem:[%s5179_s2] sm:$0xff]   ;;  %v2733_v25 = vpack.i.bf16 %v3534_v23, %v3530_v21  ;;  %v3701_v21 = vld [vmem:[%s5179_s2 + $0x8] sm:$0xff]  }
  0x4f   : > { %2694 = vrot.lane.b32.xlu0 %v2693_v24, %s3370_s21  ;;  %v3692_v27 = vrot.slane %v3372_v10, 4  ;;  %2533 = vmatprep.subr.bf16.mxu0 %v3683_v22  ;;  %v2743_v23 = vpack.i.bf16 %v3560_v41, %v3571_v48  ;;  %v3710_v36 = vrot.slane %v3372_v10, 5  ;;  %v2773_v39 = vpack.i.bf16 %v3623_v26, %v3636_v35 }
  0x50   : > { %v595_v19 = vsel %vm5190_vm1, %v443_v6, %v3666_v11  ;;  %v609_v6 = vsel %vm5189_vm2, %v465_v31, %v3676_v18  ;;  %2534 = vmatpush3.bf16.msra.mxu0 %v3683_v22 }
  0x51   : > { %v2738_v20 = vpack.i.bf16 %v595_v19, %v3521_v17  ;;  %v2748_v34 = vpack.i.bf16 %v609_v6, %v3565_v42  ;;  %v623_v31 = vsel %vm5188_vm3, %v487_v44, %v3692_v27  ;;  %2535 = vmatprep.subr.bf16.mxu0 %v3701_v21  ;;  %v3723_v44 = vld [vmem:[%s5179_s2 + $0x10] sm:$0xff]  }
  0x52   : > { %2709 = vrot.lane.b32.xlu1 %v2708_v49, %s3371_s22  ;;  %v2758_v41 = vpack.i.bf16 %v623_v31, %v3584_v53 }
  0x53   : > { %2704 = vrot.lane.b32.xlu0 %v2703_v54, %s3371_s22  ;;  %v3750_v54 = vrot.slane %v3372_v10, 7 }
  0x54   : > { %2536 = vmatpush3.bf16.msra.mxu0 %v3701_v21 }
  0x55   : > { %v3280_v24 = vpop.eup %3279  ;;  %2537 = vmatprep.subr.bf16.mxu0 %v3723_v44 }
  0x56   : > { %2719 = vrot.lane.b32.xlu1 %v2718_v46, %s3373_s23  ;;  %v3282_v29 = vpop.eup %3281  ;;  %v1471_v45 = vmul.f32 %v3280_v24, %v3478_v37  ;;  %v2753_v37 = vpack.i.bf16 %v3577_v51, %v3592_v58  ;;  %v3741_v58 = vld [vmem:[%s5179_s2 + $0x18] sm:$0xff]   ;;  %v665_v46 = vsel %vm5186_vm6, %v553_v33, %v3750_v54  ;;  %v2783_v33 = vpack.i.bf16 %v3647_v55, %v3657_v60 }
  0x57   : > { %2714 = vrot.lane.b32.xlu0 %v2713_v63, %s3373_s23  ;;  %v3284_v17 = vpop.eup %3283  ;;  %v1472_v42 = vmul.f32 %v3282_v29, %v3480_v38  ;;  %v637_v38 = vsel %vm5187_vm4, %v509_v56, %v3710_v36  ;;  %v2763_v56 = vpack.i.bf16 %v3601_v5, %v3613_v14  ;;  %v2788_v62 = vpack.i.bf16 %v665_v46, %v3652_v57 }
  0x58   : > { %v3286_v30 = vpop.eup %3285  ;;  %v1473_v47 = vmul.f32 %v3284_v17, %v3482_v40  ;;  %v3732_v40 = vrot.slane %v3372_v10, 6  ;;  %2538 = vmatpush3.bf16.msra.mxu0 %v3723_v44  ;;  %v2768_v51 = vpack.i.bf16 %v637_v38, %v3609_v12 }
  0x59   : > { %v1470_v49 = vmul.f32 %v3286_v30, %v3486_v43  ;;  %v1479_v43 = vrot.slane %v1471_v45, 1  ;;  %v1481_v48 = vrot.slane %v1472_v42, 1  ;;  %2539 = vmatprep.subr.bf16.mxu0 %v3741_v58 }
  0x5a   : > { %2729 = vrot.lane.b32.xlu1 %v2728_v13, %s3374_s24  ;;  %v1483_v53 = vrot.slane %v1473_v47, 1  ;;  %v651_v52 = vsel %vm523_vm5, %v531_v15, %v3732_v40 }
  0x5b   : > { %2724 = vrot.lane.b32.xlu0 %v2723_v16, %s3374_s24  ;;  %v1478_v50 = vrot.slane %v1470_v49, 1  ;;  %v3753_v32 = vsel %vm5191_vm0, %v1479_v43, %v1481_v48  ;;  %v2778_v14 = vpack.i.bf16 %v651_v52, %v3629_v28 }
  0x5c   : > { %v3756_v12 = vsel %vm5191_vm0, %v1481_v48, %v1483_v53  ;;  %2540 = vmatpush3.bf16.msra.mxu0 %v3741_v58  ;;  %v3769_v15 = vsel %vm5191_vm0, %v1483_v53, 0.0  ;;  %v1496_v63 = vrot.slane %v3753_v32, 1  ;;  %v1516_v13 = vrot.slane %v3753_v32, 2 }
  0x5d   : > { %v3760_v59 = vsel %vm5191_vm0, %v1478_v50, %v1479_v43  ;;  %v3763_v5 = vsel %vm5191_vm0, 0.0, %v1478_v50  ;;  %v3780_v0 = vrot.slane %v3756_v12, 1  ;;  %v1518_v16 = vrot.slane %v3756_v12, 2 }
  0x5e   : > { %2739 = vrot.lane.b32.xlu1 %v2738_v20, %s3375_s28  ;;  %v1493_v28 = vrot.slane %v3763_v5, 1  ;;  %v1494_v10 = vrot.slane %v3760_v59, 1  ;;  %v1520_v26 = vrot.slane %v3769_v15, 2  ;;  %v1513_v19 = vrot.slane %v3763_v5, 2 }
  0x5f   : > { %2734 = vrot.lane.b32.xlu0 %v2733_v25, %s3375_s28  ;;  %v3794_v35 = vsel %vm5191_vm0, %v1496_v63, %v3780_v0  ;;  %v3802_v25 = vsel %vm5190_vm1, %v1516_v13, %v1518_v16  ;;  %v1514_v57 = vrot.slane %v3760_v59, 2  ;;  %v1537_v60 = vrot.slane %v3753_v32, 3 }
  0x60   : > { %v1495_v20 = vsel %vm5191_vm0, %v1493_v28, %v1494_v10  ;;  %v3799_v24 = vsel %vm5191_vm0, %v1494_v10, %v1496_v63  ;;  %v3808_v55 = vsel %vm5190_vm1, %v1518_v16, %v1520_v26  ;;  %v1539_v6 = vrot.slane %v3756_v12, 3 }
  0x61   : > { %v1541_v29 = vrot.slane %v3769_v15, 3  ;;  %v2798_v17 = vpack.i.bf16 %v3780_v0, %v3794_v35  ;;  %v1534_v30 = vrot.slane %v3763_v5, 3  ;;  %v2808_v31 = vpack.i.bf16 %v3808_v55, %v3802_v25 }
  0x62   : > { %2749 = vrot.lane.b32.xlu1 %v2748_v34, %s3376_s11  ;;  %v1535_v34 = vrot.slane %v3760_v59, 3  ;;  %v1515_v45 = vsel %vm5190_vm1, %v1513_v19, %v1514_v57  ;;  %v3824_v42 = vsel %vm5190_vm1, %v1514_v57, %v1516_v13  ;;  %v1558_v47 = vrot.slane %v3753_v32, 4 }
  0x63   : > { %2744 = vrot.lane.b32.xlu0 %v2743_v23, %s3376_s11  ;;  %v2793_v23 = vpack.i.bf16 %v3799_v24, %v1495_v20  ;;  %v3828_v49 = vsel %vm5189_vm2, %v1537_v60, %v1539_v6  ;;  %v1562_v38 = vrot.slane %v3769_v15, 4  ;;  %v1555_v53 = vrot.slane %v3763_v5, 4 }
  0x64   : > { %v1536_v43 = vsel %vm5189_vm2, %v1534_v30, %v1535_v34  ;;  %v3840_v48 = vsel %vm5189_vm2, %v1535_v34, %v1537_v60  ;;  %v1556_v50 = vrot.slane %v3760_v59, 4  ;;  %v1579_v63 = vrot.slane %v3753_v32, 5 }
  0x65   : > { %v2813_v52 = vpack.i.bf16 %v3840_v48, %v1536_v43  ;;  %v1581_v28 = vrot.slane %v3756_v12, 5  ;;  %v1583_v13 = vrot.slane %v3769_v15, 5  ;;  %v1576_v16 = vrot.slane %v3763_v5, 5 }
  0x66   : > { %2759 = vrot.lane.b32.xlu1 %v2758_v41, %s3377_s15  ;;  %v3833_v41 = vsel %vm5189_vm2, %v1539_v6, %v1541_v29  ;;  %v1557_v46 = vsel %vm5188_vm3, %v1555_v53, %v1556_v50  ;;  %v3863_v10 = vsel %vm5188_vm3, %v1556_v50, %v1558_v47  ;;  %v1600_v57 = vrot.slane %v3753_v32, 6 }
  0x67   : > { %2754 = vrot.lane.b32.xlu0 %v2753_v37, %s3377_s15  ;;  %v1560_v37 = vrot.slane %v3756_v12, 4  ;;  %v2823_v19 = vpack.i.bf16 %v3863_v10, %v1557_v46  ;;  %v3873_v20 = vsel %vm5187_vm4, %v1579_v63, %v1581_v28  ;;  %v1602_v60 = vrot.slane %v3756_v12, 6 }
  0x68   : > { %v3881_v6 = vsel %vm5187_vm4, %v1581_v28, %v1583_v13  ;;  %v1604_v34 = vrot.slane %v3769_v15, 6  ;;  %v1621_v53 = vrot.slane %v3753_v32, 7  ;;  %v1623_v50 = vrot.slane %v3756_v12, 7 }
  0x69   : > { %v1618_v46 = vrot.slane %v3763_v5, 7 }
  0x6a   : > { %2769 = vrot.lane.b32.xlu1 %v2768_v51, %s3378_s30  ;;  %v2803_v51 = vpack.i.bf16 %v3824_v42, %v1515_v45  ;;  %v2838_v45 = vpack.i.bf16 %v3881_v6, %v3873_v20  ;;  %v3901_v43 = vsel %vm523_vm5, %v1602_v60, %v1604_v34 }
  0x6b   : > { %2764 = vrot.lane.b32.xlu0 %v2763_v56, %s3378_s30  ;;  %v2818_v56 = vpack.i.bf16 %v3833_v41, %v3828_v49 }
  0x6e   : > { %2779 = vrot.lane.b32.xlu1 %v2778_v14, %s3379_s9  ;;  %v3850_v14 = vsel %vm5188_vm3, %v1558_v47, %v1560_v37 }
  0x6f   : > { %2774 = vrot.lane.b32.xlu0 %v2773_v39, %s3379_s9  ;;  %v3856_v39 = vsel %vm5188_vm3, %v1560_v37, %v1562_v38  ;;  %v3895_v37 = vsel %vm523_vm5, %v1600_v57, %v1602_v60 }
  0x70   : > { %v2848_v28 = vpack.i.bf16 %v3901_v43, %v3895_v37 }
  0x72   : > { %2789 = vrot.lane.b32.xlu1 %v2788_v62, %s3380_s12  ;;  %v1577_v62 = vrot.slane %v3760_v59, 5 }
  0x73   : > { %2784 = vrot.lane.b32.xlu0 %v2783_v33, %s3380_s12  ;;  %v2828_v33 = vpack.i.bf16 %v3856_v39, %v3850_v14 }
  0x74   : > { %v3885_v30 = vsel %vm5187_vm4, %v1577_v62, %v1579_v63  ;;  %v1619_v63 = vrot.slane %v3760_v59, 7 }
  0x76   : > { %2799 = vrot.lane.b32.xlu1 %v2798_v17, %s3367_s18  ;;  %v1578_v17 = vsel %vm5187_vm4, %v1576_v16, %v1577_v62  ;;  %v3918_v62 = vsel %vm5186_vm6, %v1621_v53, %v1623_v50 }
  0x77   : > { %2794 = vrot.lane.b32.xlu0 %v2793_v23, %s3367_s18  ;;  %v1597_v23 = vrot.slane %v3763_v5, 6  ;;  %v2833_v47 = vpack.i.bf16 %v3885_v30, %v1578_v17  ;;  %s3382_s18 = smov 72  }
  0x7a   : > { %2809 = vrot.lane.b32.xlu1 %v2808_v31, %s3366_s17  ;;  %v1598_v31 = vrot.slane %v3760_v59, 6 }
  0x7b   : > { %2804 = vrot.lane.b32.xlu0 %v2803_v51, %s3366_s17  ;;  %v1625_v51 = vrot.slane %v3769_v15, 7 }
  0x7e   : > { %2819 = vrot.lane.b32.xlu1 %v2818_v56, %s3368_s19  ;;  %v1599_v56 = vsel %vm523_vm5, %v1597_v23, %v1598_v31  ;;  %v1651_v23 = vrot.slane %v3769_v15, 1 }
  0x7f   : > { %2814 = vrot.lane.b32.xlu0 %v2813_v52, %s3368_s19  ;;  %v3908_v52 = vsel %vm523_vm5, %v1598_v31, %v1600_v57  ;;  %v3925_v57 = vsel %vm5186_vm6, %v1619_v63, %v1621_v53  ;;  %v2868_v31 = vpack.i.bf16 %v3769_v15, %v3756_v12  ;;  %v3944_v53 = vld [vmem:[%s5183_s6] sm:$0x3]  ;;  %s3383_s19 = smov 80  }
  0x80   : > { %v2843_v16 = vpack.i.bf16 %v3908_v52, %v1599_v56  ;;  %2609 = vmatprep.subr.msk.bf16.mxu0 %vm523_vm5, %v3944_v53  ;;  %v2873_v56 = vpack.i.bf16 %v3794_v35, %v3799_v24  ;;  %v2482_v24 = vld [vmem:[%s5182_s5] ss:$0 sm:$0xff] }
  0x82   : > { %2829 = vrot.lane.b32.xlu1 %v2828_v33, %s3369_s20  ;;  %v3921_v33 = vsel %vm5186_vm6, %v1623_v50, %v1625_v51 }
  0x83   : > { %2824 = vrot.lane.b32.xlu0 %v2823_v19, %s3369_s20  ;;  %v1620_v19 = vsel %vm5186_vm6, %v1618_v46, %v1619_v63  ;;  %v2858_v60 = vpack.i.bf16 %v3921_v33, %v3918_v62  ;;  %v2883_v63 = vpack.i.bf16 %v3802_v25, %v3824_v42  ;;  %v1313_v42 = vmul.f32 %v2482_v24, %v3465_v4 }
  0x84   : > { %v2853_v17 = vpack.i.bf16 %v3925_v57, %v1620_v19  ;;  %v1717_v4 = vsel %vm523_vm5, %v1604_v34, %v3732_v40 }
  0x86   : > { %2839 = vrot.lane.b32.xlu1 %v2838_v45, %s3370_s21  ;;  %v2863_v45 = vpack.i.bf16 %v3753_v32, %v3760_v59 }
  0x87   : > { %2834 = vrot.lane.b32.xlu0 %v2833_v47, %s3370_s21  ;;  %v1652_v47 = vsel %vm5191_vm0, %v3780_v0, %v1651_v23  ;;  %v1665_v0 = vsel %vm5190_vm1, %v1520_v26, %v3666_v11  ;;  %v2893_v11 = vpack.i.bf16 %v3828_v49, %v3840_v48  ;;  %v1691_v26 = vsel %vm5188_vm3, %v1562_v38, %v3692_v27  ;;  %v2483_v49 = vld [vmem:[%s5182_s5 + $0x1] ss:$0 sm:$0xff]  ;;  %s3384_s21 = smov 88  }
  0x88   : > { %v2878_v50 = vpack.i.bf16 %v1651_v23, %v1652_v47  ;;  %v2888_v46 = vpack.i.bf16 %v1665_v0, %v3808_v55  ;;  %v2908_v25 = vpack.i.bf16 %v1691_v26, %v3856_v39  ;;  %v2903_v55 = vpack.i.bf16 %v3850_v14, %v3863_v10 }
  0x89   : > { %v2913_v48 = vpack.i.bf16 %v3873_v20, %v3885_v30  ;;  %v4000_v14 = vadd.f32 %v2483_v49, %v1313_v42  ;;  %v2923_v10 = vpack.i.bf16 %v3895_v37, %v3908_v52  ;;  %v2933_v37 = vpack.i.bf16 %v3918_v62, %v3925_v57 }
  0x8a   : > { %2849 = vrot.lane.b32.xlu1 %v2848_v28, %s3371_s22  ;;  %v1678_v28 = vsel %vm5189_vm2, %v1541_v29, %v3676_v18  ;;  %v1704_v29 = vsel %vm5187_vm4, %v1583_v13, %v3710_v36  ;;  %v1730_v13 = vsel %vm5186_vm6, %v1625_v51, %v3750_v54  ;;  %v1316_v51 = vmul.f32 %v2482_v24, %v3462_v3 }
  0x8b   : > { %2844 = vrot.lane.b32.xlu0 %v2843_v16, %s3371_s22  ;;  %v2898_v35 = vpack.i.bf16 %v1678_v28, %v3833_v41  ;;  %v1314_v41 = vmul.f32 %v2482_v24, %v3470_v7  ;;  %v2918_v38 = vpack.i.bf16 %v1704_v29, %v3881_v6  ;;  %v2928_v7 = vpack.i.bf16 %v1717_v4, %v3901_v43 }
  0x8c   : > { %v1325_v15 = vsub.f32 0.0, %v4000_v14  ;;  %v1315_v6 = vmul.f32 %v2482_v24, %v3459_v2  ;;  %v2938_v30 = vpack.i.bf16 %v1730_v13, %v3921_v33  ;;  %v4030_v33 = vadd.f32 %v2483_v49, %v1316_v51 }
  0x8d   : > { %v4002_v39 = vadd.f32 %v2483_v49, %v1314_v41  ;;  %vm723_vm6 = vcmask 326656   ;;  %vm728_vm4 = vcmask 359424   ;;  %vm733_vm3 = vcmask 392192  }
  0x8e   : > { %2859 = vrot.lane.b32.xlu1 %v2858_v60, %s3373_s23  ;;  %v1329_v43 = vmul.f32 1.442695, %v1325_v15  ;;  %v4024_v19 = vadd.f32 %v2483_v49, %v1315_v6  ;;  %v1328_v3 = vsub.f32 0.0, %v4030_v33  ;;  %vm5192_vm2 = vcmask 424960  }
  0x8f   : > { %2854 = vrot.lane.b32.xlu0 %v2853_v17, %s3373_s23  ;;  %v1326_v20 = vsub.f32 0.0, %v4002_v39  ;;  %vm743_vm1 = vcmask 457728   ;;  %vm748_vm0 = vcmask 490496   ;;  %s3385_s23 = smov 96  }
  0x90   : > { %3287 = vpow2.f32 %v1329_v43  ;;  %v1327_v62 = vsub.f32 0.0, %v4024_v19 }
  0x91   : > { %v1331_v52 = vmul.f32 1.442695, %v1326_v20 }
  0x92   : > { %2869 = vrot.lane.b32.xlu1 %v2868_v31, %s3365_s16  ;;  %v1333_v23 = vmul.f32 1.442695, %v1327_v62 }
  0x93   : > { %2864 = vrot.lane.b32.xlu0 %v2863_v45, %s3365_s16  ;;  %3289 = vpow2.f32 %v1331_v52  ;;  %v1335_v45 = vmul.f32 1.442695, %v1328_v3 }
  0x94   : > { %3291 = vpow2.f32 %v1333_v23 }
  0x95   : > { %3293 = vpow2.f32 %v1335_v45 }
  0x96   : > { %2879 = vrot.lane.b32.xlu1 %v2878_v50, %s3374_s24 }
  0x97   : > { %2874 = vrot.lane.b32.xlu0 %v2873_v56, %s3374_s24  ;;  %s3386_s24 = smov 104  }
  0x9a   : > { %2889 = vrot.lane.b32.xlu1 %v2888_v46, %s3375_s28  ;;  %v3288_v47 = vpop.eup %3287 }
  0x9b   : > { %2884 = vrot.lane.b32.xlu0 %v2883_v63, %s3375_s28  ;;  %v1337_v46 = vadd.f32 1.0, %v3288_v47 }
  0x9d   : > { %v3290_v56 = vpop.eup %3289  ;;  %3295 = vrcp.f32 %v1337_v46 }
  0x9e   : > { %2899 = vrot.lane.b32.xlu1 %v2898_v35, %s3376_s11  ;;  %v1338_v28 = vadd.f32 1.0, %v3290_v56  ;;  %v3292_v26 = vpop.eup %3291 }
  0x9f   : > { %2894 = vrot.lane.b32.xlu0 %v2893_v11, %s3376_s11  ;;  %v1339_v29 = vadd.f32 1.0, %v3292_v26 }
  0xa0   : > { %3297 = vrcp.f32 %v1338_v28 }
  0xa1   : > { %3299 = vrcp.f32 %v1339_v29 }
  0xa2   : > { %2909 = vrot.lane.b32.xlu1 %v2908_v25, %s3377_s15 }
  0xa3   : > { %2904 = vrot.lane.b32.xlu0 %v2903_v55, %s3377_s15  ;;  %v3294_v55 = vpop.eup %3293 }
  0xa6   : > { %2919 = vrot.lane.b32.xlu1 %v2918_v38, %s3378_s30 }
  0xa7   : > { %2914 = vrot.lane.b32.xlu0 %v2913_v48, %s3378_s30 }
  0xaa   : > { %2929 = vrot.lane.b32.xlu1 %v2928_v7, %s3379_s9  ;;  %v1340_v7 = vadd.f32 1.0, %v3294_v55 }
  0xab   : > { %2924 = vrot.lane.b32.xlu0 %v2923_v10, %s3379_s9  ;;  %v4017_v34 = vpop.permute.xlu1 %2649  ;;  %v3296_v10 = vpop.eup %3295 }
  0xac   : > { %v3298_v20 = vpop.eup %3297  ;;  %3301 = vrcp.f32 %v1340_v7  ;;  %v2651_v3 = vunpack.i.l.bf16 %v4017_v34 }
  0xad   : > { %v4022_v16 = vpop.permute.xlu0 %2644 }
  0xae   : > { %2939 = vrot.lane.b32.xlu1 %v2938_v30, %s3380_s12 }
  0xaf   : > { %2934 = vrot.lane.b32.xlu0 %v2933_v37, %s3380_s12  ;;  %s3381_s12 = smov 64  }
  0xb0   : > { %v4028_v2 = vpop.permute.xlu1 %2664 }
  0xb1   : > { %v2655_v60 = vpop.permute.xlu0 %2654  ;;  %v2667_v13 = vunpack.i.h.bf16 %v4028_v2  ;;  %v2666_v15 = vunpack.i.l.bf16 %v4028_v2 }
  0xb2   : > { %v2657_v42 = vunpack.i.h.bf16 %v2655_v60  ;;  %v2656_v49 = vunpack.i.l.bf16 %v2655_v60 }
  0xb4   : > { %v4033_v57 = vpop.permute.xlu1 %2669  ;;  %v680_v6 = vsel %vm678_vm7, %v3504_v8, %v2657_v42  ;;  %v679_v30 = vsel %vm678_vm7, %v3499_v1, %v2656_v49 }
  0xb5   : > { %v2660_v17 = vpop.permute.xlu0 %2659  ;;  %v2672_v37 = vunpack.i.h.bf16 %v4033_v57  ;;  %v2671_v43 = vunpack.i.l.bf16 %v4033_v57  ;;  %v684_v45 = vsel %vm683_vm8, %v679_v30, %v2666_v15  ;;  %v685_v47 = vsel %vm683_vm8, %v680_v6, %v2667_v13 }
  0xb6   : > { %v2662_v41 = vunpack.i.h.bf16 %v2660_v17  ;;  %v2661_v38 = vunpack.i.l.bf16 %v2660_v17  ;;  %v4082_v17 = vmul.f32 %v3298_v20, %v4002_v39 }
  0xb8   : > { %v4036_v31 = vpop.permute.xlu1 %2679  ;;  %v682_v52 = vsel %vm678_vm7, %v3491_v61, %v2662_v41  ;;  %v681_v51 = vsel %vm678_vm7, %v3507_v9, %v2661_v38  ;;  %v2652_v61 = vunpack.i.h.bf16 %v4017_v34  ;;  %v4079_v9 = vmul.f32 %v3296_v10, %v4000_v14 }
  0xb9   : > { %v4038_v50 = vpop.permute.xlu0 %2674  ;;  %v2682_v2 = vunpack.i.h.bf16 %v4036_v31  ;;  %v2681_v60 = vunpack.i.l.bf16 %v4036_v31  ;;  %v686_v23 = vsel %vm683_vm8, %v681_v51, %v2671_v43  ;;  %v687_v31 = vsel %vm683_vm8, %v682_v52, %v2672_v37 }
  0xba   : > { %v2677_v1 = vunpack.i.h.bf16 %v4038_v50  ;;  %v2676_v62 = vunpack.i.l.bf16 %v4038_v50 }
  0xbb   : > { %v691_v50 = vsel %vm688_vm9, %v686_v23, %v2681_v60  ;;  %v692_v56 = vsel %vm688_vm9, %v687_v31, %v2682_v2 }
  0xbc   : > { %v4040_v0 = vpop.permute.xlu1 %2689  ;;  %v689_v39 = vsel %vm688_vm9, %v684_v45, %v2676_v62  ;;  %v690_v26 = vsel %vm688_vm9, %v685_v47, %v2677_v1 }
  0xbd   : > { %v4042_v63 = vpop.permute.xlu0 %2684  ;;  %v2692_v46 = vunpack.i.h.bf16 %v4040_v0  ;;  %v2691_v14 = vunpack.i.l.bf16 %v4040_v0 }
  0xbe   : > { %v2687_v55 = vunpack.i.h.bf16 %v4042_v63  ;;  %v2686_v29 = vunpack.i.l.bf16 %v4042_v63  ;;  %v4108_v63 = vpop.eup %3299 }
  0xbf   : > { %v696_v20 = vsel %vm693_vm10, %v691_v50, %v2691_v14  ;;  %v697_v6 = vsel %vm693_vm10, %v692_v56, %v2692_v46  ;;  %v4126_v1 = vpop.eup %3301 }
  0xc0   : > { %v4044_v35 = vpop.permute.xlu1 %2699  ;;  %v694_v37 = vsel %vm693_vm10, %v689_v39, %v2686_v29 }
  0xc1   : > { %v4046_v11 = vpop.permute.xlu0 %2694  ;;  %v2702_v49 = vunpack.i.h.bf16 %v4044_v35  ;;  %v2701_v41 = vunpack.i.l.bf16 %v4044_v35 }
  0xc2   : > { %v2697_v0 = vunpack.i.h.bf16 %v4046_v11  ;;  %v2696_v38 = vunpack.i.l.bf16 %v4046_v11 }
  0xc3   : > { %v701_v51 = vsel %vm698_vm11, %v696_v20, %v2701_v41  ;;  %v702_v2 = vsel %vm698_vm11, %v697_v6, %v2702_v49  ;;  %v2647_v49 = vunpack.i.h.bf16 %v4022_v16  ;;  %v2646_v41 = vunpack.i.l.bf16 %v4022_v16 }
  0xc4   : > { %v4048_v24 = vpop.permute.xlu1 %2709  ;;  %v699_v60 = vsel %vm698_vm11, %v694_v37, %v2696_v38 }
  0xc5   : > { %v4050_v25 = vpop.permute.xlu0 %2704  ;;  %v2712_v7 = vunpack.i.h.bf16 %v4048_v24  ;;  %v2711_v10 = vunpack.i.l.bf16 %v4048_v24  ;;  %v695_v24 = vsel %vm693_vm10, %v690_v26, %v2687_v55 }
  0xc6   : > { %v2707_v13 = vunpack.i.h.bf16 %v4050_v25  ;;  %v2706_v15 = vunpack.i.l.bf16 %v4050_v25 }
  0xc7   : > { %v706_v62 = vsel %vm703_vm12, %v701_v51, %v2711_v10  ;;  %v707_v23 = vsel %vm703_vm12, %v702_v2, %v2712_v7 }
  0xc8   : > { %v4052_v48 = vpop.permute.xlu1 %2719  ;;  %v704_v31 = vsel %vm703_vm12, %v699_v60, %v2706_v15 }
  0xc9   : > { %v4054_v4 = vpop.permute.xlu0 %2714  ;;  %v2722_v35 = vunpack.i.h.bf16 %v4052_v48  ;;  %v2721_v30 = vunpack.i.l.bf16 %v4052_v48  ;;  %v700_v48 = vsel %vm698_vm11, %v695_v24, %v2697_v0 }
  0xca   : > { %v2717_v43 = vunpack.i.h.bf16 %v4054_v4  ;;  %v2716_v25 = vunpack.i.l.bf16 %v4054_v4  ;;  %v705_v4 = vsel %vm703_vm12, %v700_v48, %v2707_v13 }
  0xcb   : > { %v711_v45 = vsel %vm708_vm13, %v706_v62, %v2721_v30  ;;  %v712_v47 = vsel %vm708_vm13, %v707_v23, %v2722_v35 }
  0xcc   : > { %v4070_v8 = vpop.permute.xlu1 %2729  ;;  %v709_v14 = vsel %vm708_vm13, %v704_v31, %v2716_v25  ;;  %v710_v39 = vsel %vm708_vm13, %v705_v4, %v2717_v43  ;;  %v716_v38 = vsel %vm713_vm14, %v711_v45, %v2651_v3  ;;  %v717_v7 = vsel %vm713_vm14, %v712_v47, %v2652_v61 }
  0xcd   : > { %v4074_v57 = vpop.permute.xlu0 %2724  ;;  %v2732_v50 = vunpack.i.h.bf16 %v4070_v8  ;;  %v2731_v56 = vunpack.i.l.bf16 %v4070_v8  ;;  %v714_v15 = vsel %vm713_vm14, %v709_v14, %v2646_v41 }
  0xce   : > { %v2727_v26 = vunpack.i.h.bf16 %v4074_v57  ;;  %v2726_v55 = vunpack.i.l.bf16 %v4074_v57 }
  0xcf   : > { %v721_v13 = vsel %vm718_vm15, %v716_v38, %v2731_v56  ;;  %v722_v16 = vsel %vm718_vm15, %v717_v7, %v2732_v50 }
  0xd0   : > { %v4092_v28 = vpop.permute.xlu1 %2739  ;;  %v719_v3 = vsel %vm718_vm15, %v714_v15, %v2726_v55 }
  0xd1   : > { %v4098_v42 = vpop.permute.xlu0 %2734  ;;  %v2742_v0 = vunpack.i.h.bf16 %v4092_v28  ;;  %v2741_v8 = vunpack.i.l.bf16 %v4092_v28  ;;  %v715_v28 = vsel %vm713_vm14, %v710_v39, %v2647_v49 }
  0xd2   : > { %v2737_v57 = vunpack.i.h.bf16 %v4098_v42  ;;  %v2736_v10 = vunpack.i.l.bf16 %v4098_v42  ;;  %v720_v34 = vsel %vm718_vm15, %v715_v28, %v2727_v26 }
  0xd3   : > { %v726_v35 = vsel %vm723_vm6, %v721_v13, %v2741_v8  ;;  %v727_v30 = vsel %vm723_vm6, %v722_v16, %v2742_v0 }
  0xd4   : > { %v4114_v11 = vpop.permute.xlu1 %2749  ;;  %v724_v43 = vsel %vm723_vm6, %v719_v3, %v2736_v10  ;;  %v725_v25 = vsel %vm723_vm6, %v720_v34, %v2737_v57 }
  0xd5   : > { %v4120_v52 = vpop.permute.xlu0 %2744  ;;  %v2752_v61 = vunpack.i.h.bf16 %v4114_v11  ;;  %v2751_v6 = vunpack.i.l.bf16 %v4114_v11 }
  0xd6   : > { %v2747_v37 = vunpack.i.h.bf16 %v4120_v52  ;;  %v2746_v24 = vunpack.i.l.bf16 %v4120_v52 }
  0xd7   : > { %v731_v31 = vsel %vm728_vm4, %v726_v35, %v2751_v6  ;;  %v732_v4 = vsel %vm728_vm4, %v727_v30, %v2752_v61 }
  0xd8   : > { %v2760_v46 = vpop.permute.xlu1 %2759  ;;  %v729_v52 = vsel %vm728_vm4, %v724_v43, %v2746_v24  ;;  %v730_v56 = vsel %vm728_vm4, %v725_v25, %v2747_v37 }
  0xd9   : > { %v2755_v29 = vpop.permute.xlu0 %2754  ;;  %v2762_v51 = vunpack.i.h.bf16 %v2760_v46  ;;  %v2761_v2 = vunpack.i.l.bf16 %v2760_v46 }
  0xda   : > { %v2757_v60 = vunpack.i.h.bf16 %v2755_v29  ;;  %v2756_v48 = vunpack.i.l.bf16 %v2755_v29 }
  0xdb   : > { %v736_v46 = vsel %vm733_vm3, %v731_v31, %v2761_v2  ;;  %v737_v26 = vsel %vm733_vm3, %v732_v4, %v2762_v51  ;;  %v1349_v51 = vpack.c.bf16 %v4082_v17, %v4079_v9  ;;  %v4190_v2 = vsel %vm523_vm5, %v3944_v53, 0 }
  0xdc   : > { %v2770_v20 = vpop.permute.xlu1 %2769  ;;  %v734_v49 = vsel %vm733_vm3, %v729_v52, %v2756_v48  ;;  %v735_v41 = vsel %vm733_vm3, %v730_v56, %v2757_v60  ;;  %v1347_v48 = vmul.f32 %v4108_v63, %v4024_v19 }
  0xdd   : > { %v2765_v42 = vpop.permute.xlu0 %2764  ;;  %v2772_v62 = vunpack.i.h.bf16 %v2770_v20  ;;  %v2771_v23 = vunpack.i.l.bf16 %v2770_v20 }
  0xde   : > { %v2767_v45 = vunpack.i.h.bf16 %v2765_v42  ;;  %v2766_v47 = vunpack.i.l.bf16 %v2765_v42 }
  0xdf   : > { %v741_v0 = vsel %vm5192_vm2, %v736_v46, %v2771_v23  ;;  %v742_v8 = vsel %vm5192_vm2, %v737_v26, %v2772_v62  ;;  %v1348_v62 = vmul.f32 %v4126_v1, %v4030_v33 }
  0xe0   : > { %v2780_v11 = vpop.permute.xlu1 %2779  ;;  %v739_v7 = vsel %vm5192_vm2, %v734_v49, %v2766_v47  ;;  %v740_v57 = vsel %vm5192_vm2, %v735_v41, %v2767_v45  ;;  %vm779_vm2 = vcmask 523264  }
  0xe1   : > { %v2775_v50 = vpop.permute.xlu0 %2774  ;;  %v2782_v14 = vunpack.i.h.bf16 %v2780_v11  ;;  %v2781_v39 = vunpack.i.l.bf16 %v2780_v11  ;;  %v1350_v17 = vpack.c.bf16 %v1348_v62, %v1347_v48 }
  0xe2   : > { %v2777_v55 = vunpack.i.h.bf16 %v2775_v50  ;;  %v2776_v29 = vunpack.i.l.bf16 %v2775_v50 }
  0xe3   : > { %v746_v15 = vsel %vm743_vm1, %v741_v0, %v2781_v39  ;;  %v747_v28 = vsel %vm743_vm1, %v742_v8, %v2782_v14 }
  0xe4   : > { %v2790_v38 = vpop.permute.xlu1 %2789  ;;  %v744_v6 = vsel %vm743_vm1, %v739_v7, %v2776_v29  ;;  %v745_v42 = vsel %vm743_vm1, %v740_v57, %v2777_v55 }
  0xe5   : > { %v2792_v10 = vunpack.i.h.bf16 %v2790_v38  ;;  %v2791_v13 = vunpack.i.l.bf16 %v2790_v38  ;;  %v2785_v16 = vpop.permute.xlu0 %2784 }
  0xe6   : > { %v2787_v20 = vunpack.i.h.bf16 %v2785_v16  ;;  %v2786_v3 = vunpack.i.l.bf16 %v2785_v16 }
  0xe7   : > { %v751_v34 = vsel %vm748_vm0, %v746_v15, %v2791_v13  ;;  %v752_v61 = vsel %vm748_vm0, %v747_v28, %v2792_v10 }
  0xe8   : > { %v754_v35 = vpack.c.bf16 %v752_v61, %v751_v34  ;;  %v2800_v30 = vpop.permute.xlu1 %2799  ;;  %v749_v37 = vsel %vm748_vm0, %v744_v6, %v2786_v3  ;;  %v750_v24 = vsel %vm748_vm0, %v745_v42, %v2787_v20 }
  0xe9   : > { %v2795_v43 = vpop.permute.xlu0 %2794  ;;  %v753_v25 = vpack.c.bf16 %v750_v24, %v749_v37  ;;  %v2801_v47 = vunpack.i.l.bf16 %v2800_v30 }
  0xea   : > { %v2797_v52 = vunpack.i.h.bf16 %v2795_v43  ;;  %v2796_v56 = vunpack.i.l.bf16 %v2795_v43 }
  0xeb   : > { %2541 = vmatprep.mubr.msk.bf16.mxu0 %vm779_vm2, %v753_v25 }
  0xec   : > { %2542 = vmatmul.mubr.msk.bf16.vlgmr.msra.gmra.mrb[0].mxu0 %vm779_vm2, %v754_v35  ;;  %v2810_v60 = vpop.permute.xlu1 %2809  ;;  %v1743_v49 = vsel %vm678_vm7, %v3763_v5, %v2796_v56 }
  0xed   : > { %v2805_v23 = vpop.permute.xlu0 %2804  ;;  %2566 = vmatpush3.bf16.msra.mxu0 %v4190_v2  ;;  %2567 = vmatprep.mubr.msk.bf16.mxu0 %vm678_vm7, %v1349_v51  ;;  %v2811_v39 = vunpack.i.l.bf16 %v2810_v60 }
  0xee   : > { %2571 = vmatprep.subr.bf16.mxu0 %v3683_v22  ;;  %v2807_v46 = vunpack.i.h.bf16 %v2805_v23  ;;  %v2806_v26 = vunpack.i.l.bf16 %v2805_v23 }
  0xf0   : > { %v2820_v9 = vpop.permute.xlu1 %2819 }
  0xf1   : > { %v2815_v11 = vpop.permute.xlu0 %2814  ;;  %v2822_v41 = vunpack.i.h.bf16 %v2820_v9  ;;  %v2821_v0 = vunpack.i.l.bf16 %v2820_v9 }
  0xf2   : > { %v2816_v57 = vunpack.i.l.bf16 %v2815_v11 }
  0xf4   : > { %v2830_v31 = vpop.permute.xlu1 %2829  ;;  %2568 = vmatmul.mubr.msk.bf16.vlgmr.msra.gmra.mrb[4].mxu0 %vm678_vm7, %v1350_v17 }
  0xf5   : > { %v2825_v4 = vpop.permute.xlu0 %2824  ;;  %2572 = vmatpush3.bf16.msra.mxu0 %v3683_v22  ;;  %v2832_v13 = vunpack.i.h.bf16 %v2830_v31  ;;  %v2831_v16 = vunpack.i.l.bf16 %v2830_v31 }
  0xf6   : > { %2573 = vmatprep.subr.bf16.mxu0 %v3701_v21  ;;  %v2826_v15 = vunpack.i.l.bf16 %v2825_v4 }
  0xf8   : > { %v2840_v19 = vpop.permute.xlu1 %2839 }
  0xf9   : > { %v4204_v33 = vpop.permute.xlu0 %2834  ;;  %2574 = vmatpush3.bf16.msra.mxu0 %v3701_v21  ;;  %v2802_v21 = vunpack.i.h.bf16 %v2800_v30  ;;  %v2842_v28 = vunpack.i.h.bf16 %v2840_v19  ;;  %v2841_v5 = vunpack.i.l.bf16 %v2840_v19 }
  0xfa   : > { %2575 = vmatprep.subr.bf16.mxu0 %v3723_v44  ;;  %v2837_v61 = vunpack.i.h.bf16 %v4204_v33  ;;  %v2836_v6 = vunpack.i.l.bf16 %v4204_v33 }
  0xfb   : > { %v1746_v55 = vsel %vm678_vm7, %v3756_v12, %v2802_v21  ;;  %v2817_v12 = vunpack.i.h.bf16 %v2815_v11 }
  0xfc   : > { %v4208_v63 = vpop.permute.xlu1 %2849 }
  0xfd   : > { %v4210_v1 = vpop.permute.xlu0 %2844  ;;  %2576 = vmatpush3.bf16.msra.mxu0 %v3723_v44  ;;  %v2812_v44 = vunpack.i.h.bf16 %v2810_v60  ;;  %v2852_v37 = vunpack.i.h.bf16 %v4208_v63  ;;  %v2851_v24 = vunpack.i.l.bf16 %v4208_v63 }
  0xfe   : > { %2577 = vmatprep.subr.bf16.mxu0 %v3741_v58  ;;  %v2847_v51 = vunpack.i.h.bf16 %v4210_v1  ;;  %v2846_v60 = vunpack.i.l.bf16 %v4210_v1 }
  0xff   : > { %v1750_v7 = vsel %vm683_vm8, %v1746_v55, %v2812_v44 }
 0x100   : > { %v4214_v45 = vpop.permute.xlu1 %2859  ;;  %v1754_v34 = vsel %vm688_vm9, %v1750_v7, %v2822_v41 }
 0x101   : > { %v4216_v22 = vpop.permute.xlu0 %2854  ;;  %2578 = vmatpush3.bf16.msra.mxu0 %v3741_v58  ;;  %v1745_v58 = vsel %vm678_vm7, %v3753_v32, %v2801_v47  ;;  %v1747_v32 = vsel %vm683_vm8, %v1743_v49, %v2806_v26  ;;  %v1758_v25 = vsel %vm693_vm10, %v1754_v34, %v2832_v13  ;;  %v2861_v19 = vunpack.i.l.bf16 %v4214_v45 }
 0x102   : > { %2610 = vmatprep.subr.msk.bf16.mxu0 %vm523_vm5, %v3944_v53  ;;  %v1744_v53 = vsel %vm678_vm7, %v3760_v59, %v2797_v52  ;;  %v1749_v38 = vsel %vm683_vm8, %v1745_v58, %v2811_v39  ;;  %v2827_v59 = vunpack.i.h.bf16 %v2825_v4  ;;  %v1751_v35 = vsel %vm688_vm9, %v1747_v32, %v2816_v57 }
 0x103   : > { %v1748_v10 = vsel %vm683_vm8, %v1744_v53, %v2807_v46  ;;  %v1753_v3 = vsel %vm688_vm9, %v1749_v38, %v2821_v0  ;;  %v1755_v48 = vsel %vm693_vm10, %v1751_v35, %v2826_v15  ;;  %v1762_v9 = vsel %vm698_vm11, %v1758_v25, %v2842_v28 }
 0x104   : > { %v4221_v50 = vpop.permute.xlu1 %2869  ;;  %v1752_v30 = vsel %vm688_vm9, %v1748_v10, %v2817_v12  ;;  %v1757_v43 = vsel %vm693_vm10, %v1753_v3, %v2831_v16  ;;  %v1759_v11 = vsel %vm698_vm11, %v1755_v48, %v2836_v6  ;;  %v2862_v4 = vunpack.i.h.bf16 %v4214_v45 }
 0x105   : > { %v4223_v14 = vpop.permute.xlu0 %2864  ;;  %v1756_v62 = vsel %vm693_vm10, %v1752_v30, %v2827_v59  ;;  %v1761_v23 = vsel %vm698_vm11, %v1757_v43, %v2841_v5  ;;  %v1766_v1 = vsel %vm703_vm12, %v1762_v9, %v2852_v37  ;;  %v2857_v21 = vunpack.i.h.bf16 %v4216_v22 }
 0x106   : > { %v1760_v31 = vsel %vm698_vm11, %v1756_v62, %v2837_v61  ;;  %v1765_v63 = vsel %vm703_vm12, %v1761_v23, %v2851_v24  ;;  %v2856_v47 = vunpack.i.l.bf16 %v4216_v22  ;;  %v1763_v52 = vsel %vm703_vm12, %v1759_v11, %v2846_v60 }
 0x107   : > { %v1764_v56 = vsel %vm703_vm12, %v1760_v31, %v2847_v51  ;;  %v2872_v44 = vunpack.i.h.bf16 %v4221_v50  ;;  %v2871_v39 = vunpack.i.l.bf16 %v4221_v50  ;;  %v2867_v46 = vunpack.i.h.bf16 %v4223_v14 }
 0x108   : > { %v4229_v29 = vpop.permute.xlu1 %2879  ;;  %v2866_v45 = vunpack.i.l.bf16 %v4223_v14  ;;  %v1769_v53 = vsel %vm708_vm13, %v1765_v63, %v2861_v19  ;;  %v1770_v22 = vsel %vm708_vm13, %v1766_v1, %v2862_v4  ;;  %v1767_v50 = vsel %vm708_vm13, %v1763_v52, %v2856_v47 }
 0x109   : > { %v4235_v8 = vpop.permute.xlu0 %2874  ;;  %v2882_v26 = vunpack.i.h.bf16 %v4229_v29  ;;  %v2881_v55 = vunpack.i.l.bf16 %v4229_v29  ;;  %v1768_v38 = vsel %vm708_vm13, %v1764_v56, %v2857_v21  ;;  %v1773_v29 = vsel %vm713_vm14, %v1769_v53, %v2871_v39 }
 0x10a   : > { %v2877_v49 = vunpack.i.h.bf16 %v4235_v8  ;;  %v2876_v41 = vunpack.i.l.bf16 %v4235_v8  ;;  %v1774_v12 = vsel %vm713_vm14, %v1770_v22, %v2872_v44  ;;  %v1771_v10 = vsel %vm713_vm14, %v1767_v50, %v2866_v45 }
 0x10b   : > { %v1772_v13 = vsel %vm713_vm14, %v1768_v38, %v2867_v46  ;;  %v1777_v8 = vsel %vm718_vm15, %v1773_v29, %v2881_v55  ;;  %v1778_v16 = vsel %vm718_vm15, %v1774_v12, %v2882_v26  ;;  %vm5194_vm9 = vcmask 424960  }
 0x10c   : > { %v4241_v20 = vpop.permute.xlu1 %2889  ;;  %v1775_v15 = vsel %vm718_vm15, %v1771_v10, %v2876_v41  ;;  %v1776_v28 = vsel %vm718_vm15, %v1772_v13, %v2877_v49  ;;  %vm5195_vm11 = vmmov %vm5194_vm9  ;;  %v4321_v10 = vld [vmem:[%s5180_s3] ss:$0 sm:$0xff]  ;;  %v4326_v13 = vld [vmem:[%s5180_s3 + $0x1] ss:$0 sm:$0xff] }
 0x10d   : > { %v2885_v42 = vpop.permute.xlu0 %2884  ;;  %v2892_v14 = vunpack.i.h.bf16 %v4241_v20  ;;  %v2891_v7 = vunpack.i.l.bf16 %v4241_v20  ;;  %vm5196_vm13 = vmmov %vm5194_vm9 }
 0x10e   : > { %v2887_v57 = vunpack.i.h.bf16 %v2885_v42  ;;  %v2886_v32 = vunpack.i.l.bf16 %v2885_v42 }
 0x10f   : > { %v1781_v34 = vsel %vm723_vm6, %v1777_v8, %v2891_v7  ;;  %v1782_v61 = vsel %vm723_vm6, %v1778_v16, %v2892_v14 }
 0x110   : > { %v2900_v17 = vpop.permute.xlu1 %2899  ;;  %v1779_v35 = vsel %vm723_vm6, %v1775_v15, %v2886_v32  ;;  %v1780_v30 = vsel %vm723_vm6, %v1776_v28, %v2887_v57 }
 0x111   : > { %v2895_v33 = vpop.permute.xlu0 %2894  ;;  %v2902_v5 = vunpack.i.h.bf16 %v2900_v17  ;;  %v2901_v20 = vunpack.i.l.bf16 %v2900_v17 }
 0x112   : > { %v2897_v6 = vunpack.i.h.bf16 %v2895_v33  ;;  %v2896_v42 = vunpack.i.l.bf16 %v2895_v33 }
 0x113   : > { %v1785_v62 = vsel %vm728_vm4, %v1781_v34, %v2901_v20  ;;  %v1786_v23 = vsel %vm728_vm4, %v1782_v61, %v2902_v5 }
 0x114   : > { %v2910_v58 = vpop.permute.xlu1 %2909  ;;  %v1783_v31 = vsel %vm728_vm4, %v1779_v35, %v2896_v42  ;;  %v1784_v4 = vsel %vm728_vm4, %v1780_v30, %v2897_v6  ;;  %vm5197_vm4 = vmmov %vm5194_vm9 }
 0x115   : > { %v2905_v0 = vpop.permute.xlu0 %2904  ;;  %v2912_v37 = vunpack.i.h.bf16 %v2910_v58  ;;  %v2911_v24 = vunpack.i.l.bf16 %v2910_v58 }
 0x116   : > { %v2907_v43 = vunpack.i.h.bf16 %v2905_v0  ;;  %v2906_v25 = vunpack.i.l.bf16 %v2905_v0 }
 0x117   : > { %v1789_v63 = vsel %vm733_vm3, %v1785_v62, %v2911_v24  ;;  %v1790_v1 = vsel %vm733_vm3, %v1786_v23, %v2912_v37 }
 0x118   : > { %v2920_v59 = vpop.permute.xlu1 %2919  ;;  %v1787_v52 = vsel %vm733_vm3, %v1783_v31, %v2906_v25  ;;  %v1788_v56 = vsel %vm733_vm3, %v1784_v4, %v2907_v43 }
 0x119   : > { %v2915_v3 = vpop.permute.xlu0 %2914  ;;  %v2922_v51 = vunpack.i.h.bf16 %v2920_v59  ;;  %v2921_v60 = vunpack.i.l.bf16 %v2920_v59 }
 0x11a   : > { %v2917_v9 = vunpack.i.h.bf16 %v2915_v3  ;;  %v2916_v17 = vunpack.i.l.bf16 %v2915_v3 }
 0x11b   : > { %v1793_v44 = vsel %vm5194_vm9, %v1789_v63, %v2921_v60  ;;  %v1794_v39 = vsel %vm5195_vm11, %v1790_v1, %v2922_v51  ;;  %vm5200_vm9 = vcmask 1045504  }
 0x11c   : > { %v2930_v48 = vpop.permute.xlu1 %2929  ;;  %v1791_v45 = vsel %vm5196_vm13, %v1787_v52, %v2916_v17  ;;  %v1792_v26 = vsel %vm5197_vm4, %v1788_v56, %v2917_v9 }
 0x11d   : > { %v2925_v11 = vpop.permute.xlu0 %2924  ;;  %v2932_v19 = vunpack.i.h.bf16 %v2930_v48  ;;  %v2931_v33 = vunpack.i.l.bf16 %v2930_v48 }
 0x11e   : > { %v2927_v21 = vunpack.i.h.bf16 %v2925_v11  ;;  %v2926_v47 = vunpack.i.l.bf16 %v2925_v11 }
 0x11f   : > { %v1797_v22 = vsel %vm743_vm1, %v1793_v44, %v2931_v33  ;;  %v1798_v49 = vsel %vm743_vm1, %v1794_v39, %v2932_v19 }
 0x120   : > { %v2940_v46 = vpop.permute.xlu1 %2939  ;;  %v1795_v50 = vsel %vm743_vm1, %v1791_v45, %v2926_v47  ;;  %v1796_v38 = vsel %vm743_vm1, %v1792_v26, %v2927_v21 }
 0x121   : > { %v2942_v55 = vunpack.i.h.bf16 %v2940_v46  ;;  %v2941_v58 = vunpack.i.l.bf16 %v2940_v46  ;;  %v2935_v53 = vpop.permute.xlu0 %2934 }
 0x122   : > { %v2937_v41 = vunpack.i.h.bf16 %v2935_v53  ;;  %v2936_v0 = vunpack.i.l.bf16 %v2935_v53 }
 0x123   : > { %v1801_v14 = vsel %vm748_vm0, %v1797_v22, %v2941_v58  ;;  %v1802_v7 = vsel %vm748_vm0, %v1798_v49, %v2942_v55 }
 0x124   : > { %v1804_v29 = vpack.c.bf16 %v1802_v7, %v1801_v14  ;;  %v1799_v12 = vsel %vm748_vm0, %v1795_v50, %v2936_v0  ;;  %v1800_v57 = vsel %vm748_vm0, %v1796_v38, %v2937_v41  ;;  %vm5198_vm0 = vcmask 1046528  }
 0x125   : > { %v1803_v32 = vpack.c.bf16 %v1800_v57, %v1799_v12  ;;  %vm5199_vm15 = vmmov %vm5198_vm0 }
 0x126   : > { %vm5201_vm11 = vmmov %vm5198_vm0 }
 0x127   : > { %2579 = vmatprep.mubr.msk.bf16.mxu0 %vm779_vm2, %v1803_v32  ;;  %vm5202_vm13 = vmmov %vm5198_vm0 }
 0x128   : > { %2580 = vmatmul.mubr.msk.bf16.vlgmr.msra.gmra.mrb[8].mxu0 %vm779_vm2, %v1804_v29  ;;  %vm5203_vm4 = vmmov %vm5198_vm0 }
 0x129   : > { %2604 = vmatpush3.bf16.msra.mxu0 %v4190_v2 }
 0x1bf   : > { %v2543_v8 = vpop.f32.mrb[0].mxu0 }
 0x1c0   : > { %v841_v16 = vmul.f32 %v2543_v8, %v4321_v10  ;;  %v820_v59 = vpop.f32.mrb[1].mxu0 }
 0x1c1   : > { %v839_v15 = vmul.f32 %v4321_v10, %v820_v59  ;;  %v2544_v28 = vpop.f32.mrb[2].mxu0 }
 0x1c2   : > { %v849_v5 = vadd.f32 %v4326_v13, %v841_v16  ;;  %v842_v2 = vmul.f32 %v2544_v28, %v4321_v10  ;;  %v823_v20 = vpop.f32.mrb[3].mxu0 }
 0x1c3   : > { %v847_v3 = vadd.f32 %v4326_v13, %v839_v15  ;;  %v840_v34 = vmul.f32 %v4321_v10, %v823_v20 }
 0x1c4   : > { %v853_v61 = vsub.f32 0.0, %v849_v5  ;;  %v850_v6 = vadd.f32 %v4326_v13, %v842_v2 }
 0x1c5   : > { %v851_v42 = vsub.f32 0.0, %v847_v3  ;;  %v848_v35 = vadd.f32 %v4326_v13, %v840_v34 }
 0x1c6   : > { %v859_v30 = vmul.f32 1.442695, %v853_v61  ;;  %v854_v37 = vsub.f32 0.0, %v850_v6 }
 0x1c7   : > { %v855_v24 = vmul.f32 1.442695, %v851_v42  ;;  %v852_v43 = vsub.f32 0.0, %v848_v35  ;;  %v4336_v25 = vpop.f32.mrb[4].mxu0 }
 0x1c8   : > { %3303 = vpow2.f32 %v859_v30  ;;  %v861_v51 = vmul.f32 1.442695, %v854_v37  ;;  %v4338_v60 = vpop.f32.mrb[5].mxu0 }
 0x1c9   : > { %3305 = vpow2.f32 %v855_v24  ;;  %v857_v48 = vmul.f32 1.442695, %v852_v43  ;;  %v4340_v62 = vpop.f32.mrb[6].mxu0 }
 0x1ca   : > { %3307 = vpow2.f32 %v861_v51  ;;  %v4342_v23 = vpop.f32.mrb[7].mxu0 }
 0x1cb   : > { %3309 = vpow2.f32 %v857_v48 }
 0x1d2   : > { %v3304_v9 = vpop.eup %3303 }
 0x1d3   : > { %v3306_v17 = vpop.eup %3305  ;;  %v865_v11 = vadd.f32 1.0, %v3304_v9 }
 0x1d4   : > { %v3308_v31 = vpop.eup %3307  ;;  %v863_v4 = vadd.f32 1.0, %v3306_v17 }
 0x1d5   : > { %v3310_v19 = vpop.eup %3309  ;;  %3311 = vrcp.f32 %v865_v11  ;;  %v866_v33 = vadd.f32 1.0, %v3308_v31 }
 0x1d6   : > { %3313 = vrcp.f32 %v863_v4  ;;  %v864_v63 = vadd.f32 1.0, %v3310_v19 }
 0x1d7   : > { %3315 = vrcp.f32 %v866_v33 }
 0x1d8   : > { %3317 = vrcp.f32 %v864_v63 }
 0x1df   : > { %v3312_v1 = vpop.eup %3311 }
 0x1e0   : > { %v3314_v21 = vpop.eup %3313  ;;  %v873_v47 = vmul.f32 %v3312_v1, %v849_v5 }
 0x1e1   : > { %v3316_v52 = vpop.eup %3315  ;;  %v871_v56 = vmul.f32 %v3314_v21, %v847_v3 }
 0x1e2   : > { %v3318_v44 = vpop.eup %3317  ;;  %v874_v39 = vmul.f32 %v3316_v52, %v850_v6  ;;  %v882_v26 = vrot.slane %v873_v47, 1 }
 0x1e3   : > { %v879_v46 = vrot.slane %v871_v56, 1  ;;  %v872_v45 = vmul.f32 %v3318_v44, %v848_v35 }
 0x1e4   : > { %v884_v55 = vrot.slane %v874_v39, 1 }
 0x1e5   : > { %v4345_v58 = vsel %vm5198_vm0, 0.0, %v879_v46  ;;  %v880_v53 = vrot.slane %v872_v45, 1 }
 0x1e6   : > { %v4348_v22 = vsel %vm5199_vm15, %v882_v26, %v884_v55  ;;  %v4351_v49 = vsel %vm5200_vm9, %v884_v55, 0.0  ;;  %v894_v41 = vrot.slane %v4345_v58, 1  ;;  %vm5204_vm15 = vmmov %vm5198_vm0  ;;  %v913_v2 = vrot.slane %v4345_v58, 2 }
 0x1e7   : > { %v4355_v0 = vsel %vm5201_vm11, %v879_v46, %v880_v53  ;;  %v4358_v50 = vsel %vm5202_vm13, %v880_v53, %v882_v26  ;;  %v2943_v38 = vpack.i.bf16 %v4351_v49, %v4348_v22  ;;  %v4363_v14 = vrot.slane %v4348_v22, 1  ;;  %vm5205_vm11 = vmmov %vm5200_vm9 }
 0x1e8   : > { %v2948_v7 = vpack.i.bf16 %v4358_v50, %v4355_v0  ;;  %v1050_v29 = vrot.slane %v4351_v49, 1  ;;  %v895_v12 = vrot.slane %v4355_v0, 1  ;;  %v897_v57 = vrot.slane %v4358_v50, 1  ;;  %vm5206_vm13 = vmmov %vm5200_vm9 }
 0x1e9   : > { %2944 = vrot.lane.b32.xlu1 %v2943_v38, %s3381_s12  ;;  %v4372_v32 = vrot.slane %v4348_v22, 2  ;;  %v1064_v8 = vrot.slane %v4351_v49, 2  ;;  %v914_v16 = vrot.slane %v4355_v0, 2  ;;  %v916_v59 = vrot.slane %v4358_v50, 2 }
 0x1ea   : > { %2949 = vrot.lane.b32.xlu0 %v2948_v7, %s3381_s12  ;;  %v1051_v15 = vsel %vm5203_vm4, %v4363_v14, %v1050_v29  ;;  %v896_v28 = vsel %vm5198_vm0, %v894_v41, %v895_v12  ;;  %v4384_v5 = vsel %vm5204_vm15, %v895_v12, %v897_v57  ;;  %v938_v61 = vrot.slane %v4348_v22, 3 }
 0x1eb   : > { %v2953_v20 = vpack.i.bf16 %v1050_v29, %v1051_v15  ;;  %v2988_v3 = vpack.i.bf16 %v4384_v5, %v896_v28  ;;  %v1065_v34 = vsel %vm5200_vm9, %v4372_v32, %v1064_v8  ;;  %v940_v6 = vrot.slane %v4351_v49, 3 }
 0x1ec   : > { %v915_v42 = vsel %vm5205_vm11, %v913_v2, %v914_v16  ;;  %v4397_v35 = vsel %vm5206_vm13, %v914_v16, %v916_v59  ;;  %v934_v30 = vrot.slane %v4355_v0, 3  ;;  %v936_v37 = vrot.slane %v4358_v50, 3 }
 0x1ed   : > { %2954 = vrot.lane.b32.xlu1 %v2953_v20, %s3382_s18  ;;  %v2958_v24 = vpack.i.bf16 %v1064_v8, %v1065_v34  ;;  %v959_v43 = vrot.slane %v4348_v22, 4  ;;  %v961_v51 = vrot.slane %v4351_v49, 4  ;;  %vm5207_vm4 = vcmask 1044480  }
 0x1ee   : > { %2989 = vrot.lane.b32.xlu0 %v2988_v3, %s3366_s17  ;;  %v4407_v48 = vsel %vm5207_vm4, %v938_v61, %v940_v6  ;;  %vm5208_vm0 = vmmov %vm5207_vm4  ;;  %v933_v17 = vrot.slane %v4345_v58, 3  ;;  %v955_v11 = vrot.slane %v4355_v0, 4  ;;  %v2998_v31 = vpack.i.bf16 %v4397_v35, %v915_v42 }
 0x1ef   : > { %v1078_v9 = vsel %vm5208_vm0, %v940_v6, %v3676_v18  ;;  %v957_v4 = vrot.slane %v4358_v50, 4  ;;  %vm5209_vm15 = vmmov %vm5208_vm0  ;;  %v954_v63 = vrot.slane %v4345_v58, 4  ;;  %vm5211_vm11 = vcmask 1043456  }
 0x1f0   : > { %v935_v19 = vsel %vm5209_vm15, %v933_v17, %v934_v30  ;;  %vm5210_vm9 = vmmov %vm5208_vm0  ;;  %v2963_v1 = vpack.i.bf16 %v1078_v9, %v4407_v48  ;;  %v4428_v21 = vsel %vm5211_vm11, %v959_v43, %v961_v51  ;;  %v980_v44 = vrot.slane %v4348_v22, 5 }
 0x1f1   : > { %2959 = vrot.lane.b32.xlu1 %v2958_v24, %s3383_s19  ;;  %v4420_v33 = vsel %vm5210_vm9, %v934_v30, %v936_v37  ;;  %vm5212_vm13 = vmmov %vm5211_vm11  ;;  %v982_v39 = vrot.slane %v4351_v49, 5  ;;  %v976_v45 = vrot.slane %v4355_v0, 5  ;;  %v978_v26 = vrot.slane %v4358_v50, 5 }
 0x1f2   : > { %2999 = vrot.lane.b32.xlu0 %v2998_v31, %s3369_s20  ;;  %v1091_v47 = vsel %vm5212_vm13, %v961_v51, %v3692_v27  ;;  %vm5213_vm4 = vmmov %vm5211_vm11  ;;  %v3008_v46 = vpack.i.bf16 %v4420_v33, %v935_v19  ;;  %v975_v41 = vrot.slane %v4345_v58, 5  ;;  %vm5215_vm15 = vcmask 1042432  }
 0x1f3   : > { %v956_v52 = vsel %vm5213_vm4, %v954_v63, %v955_v11  ;;  %vm5214_vm0 = vmmov %vm5213_vm4  ;;  %v2968_v55 = vpack.i.bf16 %v1091_v47, %v4428_v21  ;;  %v4451_v38 = vsel %vm5215_vm15, %v980_v44, %v982_v39  ;;  %v1001_v29 = vrot.slane %v4348_v22, 6 }
 0x1f4   : > { %v4436_v56 = vsel %vm5214_vm0, %v955_v11, %v957_v4  ;;  %vm5216_vm9 = vmmov %vm5215_vm15  ;;  %v1003_v12 = vrot.slane %v4351_v49, 6  ;;  %v997_v15 = vrot.slane %v4355_v0, 6  ;;  %v999_v28 = vrot.slane %v4358_v50, 6 }
 0x1f5   : > { %2964 = vrot.lane.b32.xlu1 %v2963_v1, %s3384_s21  ;;  %v3018_v53 = vpack.i.bf16 %v4436_v56, %v956_v52  ;;  %v1104_v7 = vsel %vm5216_vm9, %v982_v39, %v3710_v36  ;;  %vm5217_vm11 = vmmov %vm5216_vm9  ;;  %v996_v20 = vrot.slane %v4345_v58, 6  ;;  %v1022_v30 = vrot.slane %v4348_v22, 7 }
 0x1f6   : > { %3009 = vrot.lane.b32.xlu0 %v3008_v46, %s3371_s22  ;;  %v977_v8 = vsel %vm5217_vm11, %v975_v41, %v976_v45  ;;  %vm5218_vm13 = vmmov %vm5216_vm9  ;;  %v2973_v2 = vpack.i.bf16 %v1104_v7, %v4451_v38  ;;  %v4473_v6 = vsel %vm523_vm5, %v1001_v29, %v1003_v12  ;;  %v1117_v42 = vsel %vm523_vm5, %v1003_v12, %v3732_v40 }
 0x1f7   : > { %v4461_v16 = vsel %vm5218_vm13, %v976_v45, %v978_v26  ;;  %v998_v9 = vsel %vm523_vm5, %v996_v20, %v997_v15  ;;  %v4483_v17 = vsel %vm523_vm5, %v997_v15, %v999_v28  ;;  %v1024_v11 = vrot.slane %v4351_v49, 7 }
 0x1f8   : > { %v3028_v34 = vpack.i.bf16 %v4461_v16, %v977_v8  ;;  %v1018_v63 = vrot.slane %v4355_v0, 7  ;;  %v1020_v1 = vrot.slane %v4358_v50, 7  ;;  %v2978_v49 = vpack.i.bf16 %v1117_v42, %v4473_v6 }
 0x1f9   : > { %2969 = vrot.lane.b32.xlu1 %v2968_v55, %s3385_s23  ;;  %v3038_v55 = vpack.i.bf16 %v4483_v17, %v998_v9  ;;  %vm5219_vm4 = vcmask 1040384   ;;  %vm5223_vm11 = vcmask 1046528   ;;  %vm5224_vm13 = vcmask 1045504  }
 0x1fa   : > { %3019 = vrot.lane.b32.xlu0 %v3018_v53, %s3365_s16  ;;  %v1017_v53 = vrot.slane %v4345_v58, 7  ;;  %v4509_v12 = vsel %vm5219_vm4, %v1022_v30, %v1024_v11  ;;  %vm5220_vm0 = vmmov %vm5219_vm4  ;;  %vm5225_vm4 = vcmask 1044480  }
 0x1fb   : > { %v2581_v3 = vpop.f32.mrb[8].mxu0  ;;  %v1130_v8 = vsel %vm5220_vm0, %v1024_v11, %v3750_v54  ;;  %vm5221_vm15 = vmmov %vm5220_vm0 }
 0x1fc   : > { %v1862_v24 = vmul.f32 %v2581_v3, %v4321_v10  ;;  %v1845_v51 = vpop.f32.mrb[9].mxu0  ;;  %vm5222_vm9 = vmmov %vm5220_vm0  ;;  %vm5226_vm0 = vcmask 1043456  }
 0x1fd   : > { %v1860_v31 = vmul.f32 %v4321_v10, %v1845_v51  ;;  %2974 = vrot.lane.b32.xlu1 %v2973_v2, %s3386_s24  ;;  %v2582_v19 = vpop.f32.mrb[10].mxu0  ;;  %v1019_v2 = vsel %vm5221_vm15, %v1017_v53, %v1018_v63  ;;  %v4522_v20 = vsel %vm5222_vm9, %v1018_v63, %v1020_v1  ;;  %v4531_v51 = vld [vmem:[%s5181_s4] sm:$0xff]   ;;  %vm5227_vm15 = vcmask 1042432  }
 0x1fe   : > { %v4491_v47 = vadd.f32 %v4326_v13, %v1862_v24  ;;  %v1863_v52 = vmul.f32 %v2582_v19, %v4321_v10  ;;  %v1848_v39 = vpop.f32.mrb[11].mxu0  ;;  %3029 = vrot.lane.b32.xlu0 %v3028_v34, %s3375_s28  ;;  %v3048_v11 = vpack.i.bf16 %v4522_v20, %v1019_v2  ;;  %2545 = vmatprep.subr.bf16.mxu1 %v4531_v51 }
 0x1ff   : > { %v4497_v46 = vadd.f32 %v4326_v13, %v1860_v31  ;;  %v1861_v45 = vmul.f32 %v4321_v10, %v1848_v39  ;;  %v900_v31 = vsel %vm5223_vm11, %v897_v57, %v4363_v14  ;;  %2546 = vmatpush3.bf16.msra.mxu1 %v4531_v51  ;;  %v919_v39 = vsel %vm5224_vm13, %v916_v59, %v4372_v32  ;;  %vm5228_vm13 = vmmov %vm5223_vm11 }
 0x200   : > { %v1870_v41 = vsub.f32 0.0, %v4491_v47  ;;  %v4504_v7 = vadd.f32 %v4326_v13, %v1863_v52  ;;  %v2993_v63 = vpack.i.bf16 %v4363_v14, %v900_v31  ;;  %v4546_v52 = vld [vmem:[%s5181_s4 + $0x8] sm:$0xff]   ;;  %v3058_v57 = vpack.i.bf16 %v900_v31, %v4384_v5 }
 0x201   : > { %v1868_v15 = vsub.f32 0.0, %v4497_v46  ;;  %v4515_v10 = vadd.f32 %v4326_v13, %v1861_v45  ;;  %2979 = vrot.lane.b32.xlu1 %v2978_v49, %s3387_s14  ;;  %v2983_v13 = vpack.i.bf16 %v1130_v8, %v4509_v12  ;;  %2547 = vmatprep.subr.bf16.mxu1 %v4546_v52  ;;  %v3003_v14 = vpack.i.bf16 %v4372_v32, %v919_v39  ;;  %v4561_v49 = vld [vmem:[%s5181_s4 + $0x10] sm:$0xff]   ;;  %v4576_v32 = vld [vmem:[%s5181_s4 + $0x18] sm:$0xff]  }
 0x202   : > { %v1876_v3 = vmul.f32 1.442695, %v1870_v41  ;;  %v1871_v34 = vsub.f32 0.0, %v4504_v7  ;;  %3039 = vrot.lane.b32.xlu0 %v3038_v55, %s3377_s15  ;;  %v3063_v5 = vpack.i.bf16 %v919_v39, %v4397_v35  ;;  %v939_v59 = vsel %vm5225_vm4, %v936_v37, %v938_v61 }
 0x203   : > { %v1872_v42 = vmul.f32 1.442695, %v1868_v15  ;;  %v1869_v24 = vsub.f32 0.0, %v4515_v10  ;;  %2548 = vmatpush3.bf16.msra.mxu1 %v4546_v52  ;;  %v3013_v53 = vpack.i.bf16 %v4407_v48, %v939_v59  ;;  %v3068_v37 = vpack.i.bf16 %v939_v59, %v4420_v33  ;;  %v4592_v48 = vld [vmem:[%s5181_s4 + $0x20] sm:$0xff]  }
 0x204   : > { %3319 = vpow2.f32 %v1876_v3  ;;  %v1878_v9 = vmul.f32 1.442695, %v1871_v34  ;;  %2549 = vmatprep.subr.bf16.mxu1 %v4561_v49  ;;  %v960_v8 = vsel %vm5226_vm0, %v957_v4, %v959_v43  ;;  %v981_v33 = vsel %vm5227_vm15, %v978_v26, %v980_v44  ;;  %v4616_v44 = vld [vmem:[%s5181_s4 + $0x28] sm:$0xff]   ;;  %v4621_v26 = vld [vmem:[%s5181_s4 + $0x30] sm:$0xff]   ;;  %vm5230_vm0 = vmmov %vm5223_vm11 }
 0x205   : > { %3321 = vpow2.f32 %v1872_v42  ;;  %v1874_v19 = vmul.f32 1.442695, %v1869_v24  ;;  %2984 = vrot.lane.b32.xlu1 %v2983_v13, %s3388_s26  ;;  %v3023_v43 = vpack.i.bf16 %v4428_v21, %v960_v8  ;;  %v3073_v4 = vpack.i.bf16 %v960_v8, %v4436_v56  ;;  %vm5231_vm15 = vmmov %vm5230_vm0 }
 0x206   : > { %3323 = vpow2.f32 %v1878_v9  ;;  %3049 = vrot.lane.b32.xlu0 %v3048_v11, %s3379_s9  ;;  %v3033_v34 = vpack.i.bf16 %v4451_v38, %v981_v33  ;;  %v3078_v21 = vpack.i.bf16 %v981_v33, %v4461_v16  ;;  %v1002_v56 = vsel %vm523_vm5, %v999_v28, %v1001_v29 }
 0x207   : > { %3325 = vpow2.f32 %v1874_v19  ;;  %2550 = vmatpush3.bf16.msra.mxu1 %v4561_v49  ;;  %v3043_v16 = vpack.i.bf16 %v4473_v6, %v1002_v56  ;;  %v3083_v42 = vpack.i.bf16 %v1002_v56, %v4483_v17  ;;  %v1023_v24 = vsel %vm5222_vm9, %v1020_v1, %v1022_v30  ;;  %v4644_v30 = vld [vmem:[%s5181_s4 + $0x38] sm:$0xff]   ;;  %vm5232_vm9 = vmmov %vm5230_vm0 }
 0x208   : > { %2551 = vmatprep.subr.bf16.mxu1 %v4576_v32  ;;  %v3053_v31 = vpack.i.bf16 %v4509_v12, %v1023_v24  ;;  %v3088_v19 = vpack.i.bf16 %v1023_v24, %v4522_v20  ;;  %vm5229_vm4 = vcmask 1045504  }
 0x209   : > { %2994 = vrot.lane.b32.xlu1 %v2993_v63, %s3366_s17 }
 0x20a   : > { %3059 = vrot.lane.b32.xlu0 %v3058_v57, %s3382_s18 }
 0x20b   : > { %2552 = vmatpush3.bf16.msra.mxu1 %v4576_v32 }
 0x20c   : > { %2553 = vmatprep.subr.bf16.mxu1 %v4592_v48 }
 0x20d   : > { %3004 = vrot.lane.b32.xlu1 %v3003_v14, %s3369_s20 }
 0x20e   : > { %v3320_v45 = vpop.eup %3319  ;;  %3064 = vrot.lane.b32.xlu0 %v3063_v5, %s3383_s19 }
 0x20f   : > { %v3322_v35 = vpop.eup %3321  ;;  %v1882_v55 = vadd.f32 1.0, %v3320_v45  ;;  %2554 = vmatpush3.bf16.msra.mxu1 %v4592_v48 }
 0x210   : > { %v3324_v41 = vpop.eup %3323  ;;  %v1880_v61 = vadd.f32 1.0, %v3322_v35  ;;  %2555 = vmatprep.subr.bf16.mxu1 %v4616_v44 }
 0x211   : > { %v3326_v15 = vpop.eup %3325  ;;  %3327 = vrcp.f32 %v1882_v55  ;;  %v1883_v2 = vadd.f32 1.0, %v3324_v41  ;;  %3014 = vrot.lane.b32.xlu1 %v3013_v53, %s3371_s22 }
 0x212   : > { %3329 = vrcp.f32 %v1880_v61  ;;  %v1881_v3 = vadd.f32 1.0, %v3326_v15  ;;  %3069 = vrot.lane.b32.xlu0 %v3068_v37, %s3384_s21 }
 0x213   : > { %3331 = vrcp.f32 %v1883_v2  ;;  %2556 = vmatpush3.bf16.msra.mxu1 %v4616_v44 }
 0x214   : > { %3333 = vrcp.f32 %v1881_v3  ;;  %2557 = vmatprep.subr.bf16.mxu1 %v4621_v26 }
 0x215   : > { %3024 = vrot.lane.b32.xlu1 %v3023_v43, %s3365_s16 }
 0x216   : > { %3074 = vrot.lane.b32.xlu0 %v3073_v4, %s3385_s23 }
 0x217   : > { %2558 = vmatpush3.bf16.msra.mxu1 %v4621_v26 }
 0x218   : > { %2559 = vmatprep.subr.bf16.mxu1 %v4644_v30 }
 0x219   : > { %3034 = vrot.lane.b32.xlu1 %v3033_v34, %s3375_s28 }
 0x21a   : > { %3079 = vrot.lane.b32.xlu0 %v3078_v21, %s3386_s24 }
 0x21b   : > { %v3328_v38 = vpop.eup %3327  ;;  %2560 = vmatpush3.bf16.msra.mxu1 %v4644_v30 }
 0x21c   : > { %v3330_v29 = vpop.eup %3329  ;;  %v1890_v28 = vmul.f32 %v3328_v38, %v4491_v47  ;;  %2583 = vmatprep.subr.bf16.mxu1 %v4531_v51 }
 0x21d   : > { %v3332_v13 = vpop.eup %3331  ;;  %v1888_v9 = vmul.f32 %v3330_v29, %v4497_v46  ;;  %3044 = vrot.lane.b32.xlu1 %v3043_v16, %s3377_s15 }
 0x21e   : > { %v3334_v6 = vpop.eup %3333  ;;  %v1891_v47 = vmul.f32 %v3332_v13, %v4504_v7  ;;  %3084 = vrot.lane.b32.xlu0 %v3083_v42, %s3387_s14  ;;  %v1899_v1 = vrot.slane %v1890_v28, 1 }
 0x21f   : > { %v1896_v17 = vrot.slane %v1888_v9, 1  ;;  %v1889_v11 = vmul.f32 %v3334_v6, %v4515_v10 }
 0x220   : > { %v1901_v46 = vrot.slane %v1891_v47, 1 }
 0x221   : > { %v4649_v7 = vsel %vm5223_vm11, 0.0, %v1896_v17  ;;  %v1897_v63 = vrot.slane %v1889_v11, 1  ;;  %3054 = vrot.lane.b32.xlu1 %v3053_v31, %s3379_s9  ;;  %vm5233_vm11 = vmmov %vm5230_vm0 }
 0x222   : > { %v4654_v12 = vsel %vm5228_vm13, %v1899_v1, %v1901_v46  ;;  %v4657_v10 = vsel %vm5229_vm4, %v1901_v46, 0.0  ;;  %3089 = vrot.lane.b32.xlu0 %v3088_v19, %s3388_s26  ;;  %v1911_v20 = vrot.slane %v4649_v7, 1  ;;  %vm5234_vm13 = vmmov %vm5230_vm0  ;;  %v1930_v3 = vrot.slane %v4649_v7, 2 }
 0x223   : > { %v4662_v57 = vsel %vm5230_vm0, %v1896_v17, %v1897_v63  ;;  %v4665_v39 = vsel %vm5231_vm15, %v1897_v63, %v1899_v1  ;;  %v3093_v14 = vpack.i.bf16 %v4657_v10, %v4654_v12  ;;  %v4670_v5 = vrot.slane %v4654_v12, 1  ;;  %vm5235_vm0 = vmmov %vm5229_vm4 }
 0x224   : > { %v3098_v59 = vpack.i.bf16 %v4665_v39, %v4662_v57  ;;  %v2067_v45 = vrot.slane %v4657_v10, 1  ;;  %v1912_v35 = vrot.slane %v4662_v57, 1  ;;  %v1914_v55 = vrot.slane %v4665_v39, 1  ;;  %vm5236_vm15 = vmmov %vm5235_vm0 }
 0x225   : > { %3094 = vrot.lane.b32.xlu1 %v3093_v14, %s3381_s12  ;;  %v4680_v53 = vrot.slane %v4654_v12, 2  ;;  %v2081_v41 = vrot.slane %v4657_v10, 2  ;;  %v1931_v61 = vrot.slane %v4662_v57, 2  ;;  %v1933_v37 = vrot.slane %v4665_v39, 2 }
 0x226   : > { %3099 = vrot.lane.b32.xlu0 %v3098_v59, %s3381_s12  ;;  %v2068_v8 = vsel %vm5232_vm9, %v4670_v5, %v2067_v45  ;;  %v4692_v15 = vsel %vm5233_vm11, %v1912_v35, %v1914_v55  ;;  %v1913_v2 = vsel %vm5234_vm13, %v1911_v20, %v1912_v35  ;;  %v1955_v56 = vrot.slane %v4654_v12, 3 }
 0x227   : > { %v3103_v43 = vpack.i.bf16 %v2067_v45, %v2068_v8  ;;  %v3128_v4 = vpack.i.bf16 %v4692_v15, %v1913_v2  ;;  %v2082_v33 = vsel %vm5229_vm4, %v4680_v53, %v2081_v41  ;;  %v4702_v34 = vsel %vm5235_vm0, %v1931_v61, %v1933_v37 }
 0x228   : > { %v1932_v21 = vsel %vm5236_vm15, %v1930_v3, %v1931_v61  ;;  %v1957_v38 = vrot.slane %v4657_v10, 3  ;;  %v1953_v16 = vrot.slane %v4665_v39, 3  ;;  %v1950_v29 = vrot.slane %v4649_v7, 3 }
 0x229   : > { %3104 = vrot.lane.b32.xlu1 %v3103_v43, %s3382_s18  ;;  %v1951_v28 = vrot.slane %v4662_v57, 3  ;;  %v3108_v42 = vpack.i.bf16 %v2081_v41, %v2082_v33  ;;  %v3138_v24 = vpack.i.bf16 %v4702_v34, %v1932_v21  ;;  %vm5237_vm9 = vcmask 1044480  }
 0x22a   : > { %3129 = vrot.lane.b32.xlu0 %v3128_v4, %s3366_s17  ;;  %v1958_v13 = vsel %vm5237_vm9, %v1955_v56, %v1957_v38  ;;  %v1976_v9 = vrot.slane %v4654_v12, 4  ;;  %vm5238_vm11 = vmmov %vm5237_vm9  ;;  %v1978_v11 = vrot.slane %v4657_v10, 4  ;;  %v1972_v31 = vrot.slane %v4662_v57, 4 }
 0x22b   : > { %v2095_v6 = vsel %vm5238_vm11, %v1957_v38, %v3676_v18  ;;  %vm5239_vm13 = vmmov %vm5237_vm9  ;;  %v1974_v1 = vrot.slane %v4665_v39, 4  ;;  %v1971_v18 = vrot.slane %v4649_v7, 4  ;;  %vm5241_vm0 = vcmask 1043456  }
 0x22c   : > { %v4718_v47 = vsel %vm5239_vm13, %v1951_v28, %v1953_v16  ;;  %vm5240_vm4 = vmmov %vm5237_vm9  ;;  %v3113_v46 = vpack.i.bf16 %v2095_v6, %v1958_v13  ;;  %v1979_v63 = vsel %vm5241_vm0, %v1976_v9, %v1978_v11  ;;  %v1997_v14 = vrot.slane %v4654_v12, 5 }
 0x22d   : > { %v1952_v17 = vsel %vm5240_vm4, %v1950_v29, %v1951_v28  ;;  %3109 = vrot.lane.b32.xlu1 %v3108_v42, %s3383_s19  ;;  %vm5242_vm15 = vmmov %vm5241_vm0  ;;  %v1999_v59 = vrot.slane %v4657_v10, 5  ;;  %v1993_v41 = vrot.slane %v4662_v57, 5  ;;  %v1995_v61 = vrot.slane %v4665_v39, 5 }
 0x22e   : > { %3139 = vrot.lane.b32.xlu0 %v3138_v24, %s3369_s20  ;;  %v3148_v19 = vpack.i.bf16 %v4718_v47, %v1952_v17  ;;  %v2108_v20 = vsel %vm5242_vm15, %v1978_v11, %v3692_v27  ;;  %vm5243_vm9 = vmmov %vm5241_vm0  ;;  %v1992_v27 = vrot.slane %v4649_v7, 5  ;;  %vm5245_vm13 = vcmask 1042432  }
 0x22f   : > { %v1973_v45 = vsel %vm5243_vm9, %v1971_v18, %v1972_v31  ;;  %vm5244_vm11 = vmmov %vm5241_vm0  ;;  %v3118_v8 = vpack.i.bf16 %v2108_v20, %v1979_v63  ;;  %v4744_v3 = vsel %vm5245_vm13, %v1997_v14, %v1999_v59  ;;  %v2014_v21 = vrot.slane %v4662_v57, 6 }
 0x230   : > { %v4736_v35 = vsel %vm5244_vm11, %v1972_v31, %v1974_v1  ;;  %vm5246_vm4 = vmmov %vm5245_vm13  ;;  %v2016_v38 = vrot.slane %v4665_v39, 6  ;;  %v2013_v28 = vrot.slane %v4649_v7, 6  ;;  %vm5249_vm9 = vcmask 1046528  }
 0x231   : > { %3114 = vrot.lane.b32.xlu1 %v3113_v46, %s3384_s21  ;;  %v3158_v2 = vpack.i.bf16 %v4736_v35, %v1973_v45  ;;  %v2121_v43 = vsel %vm5246_vm4, %v1999_v59, %v3710_v36  ;;  %vm5247_vm0 = vmmov %vm5246_vm4  ;;  %v1917_v36 = vsel %vm5249_vm9, %v1914_v55, %v4670_v5  ;;  %v2035_v17 = vrot.slane %v4662_v57, 7 }
 0x232   : > { %3149 = vrot.lane.b32.xlu0 %v3148_v19, %s3371_s22  ;;  %v1994_v4 = vsel %vm5247_vm0, %v1992_v27, %v1993_v41  ;;  %vm5248_vm15 = vmmov %vm5247_vm0  ;;  %v3123_v29 = vpack.i.bf16 %v2121_v43, %v4744_v3  ;;  %v2015_v24 = vsel %vm523_vm5, %v2013_v28, %v2014_v21  ;;  %v4766_v6 = vsel %vm523_vm5, %v2014_v21, %v2016_v38  ;;  %v3355_v21 = vld [vmem:[%s3453_s13 + $0x38] sm:$0xff] }
 0x233   : > { %v4751_v33 = vsel %vm5248_vm15, %v1993_v41, %v1995_v61  ;;  %v2037_v11 = vrot.slane %v4665_v39, 7  ;;  %v3133_v31 = vpack.i.bf16 %v4670_v5, %v1917_v36  ;;  %v2034_v46 = vrot.slane %v4649_v7, 7 }
 0x234   : > { %v3168_v42 = vpack.i.bf16 %v4751_v33, %v1994_v4  ;;  %vm5250_vm11 = vcmask 1045504   ;;  %v3178_v19 = vpack.i.bf16 %v4766_v6, %v2015_v24  ;;  %vm5251_vm13 = vcmask 1040384   ;;  %v3354_v4 = vld [vmem:[%s3453_s13 + $0x30] sm:$0xff] }
 0x235   : > { %3119 = vrot.lane.b32.xlu1 %v3118_v8, %s3385_s23  ;;  %v1936_v55 = vsel %vm5250_vm11, %v1933_v37, %v4680_v53  ;;  %v2036_v18 = vsel %vm5251_vm13, %v2034_v46, %v2035_v17  ;;  %vm5252_vm4 = vmmov %vm5251_vm13  ;;  %vm5253_vm0 = vcmask 1044480   ;;  %v3203_v41 = vpack.i.bf16 %v1917_v36, %v4692_v15  ;;  %v3352_v15 = vld [vmem:[%s5182_s5] ss:$0 sm:$0xff] }
 0x236   : > { %3159 = vrot.lane.b32.xlu0 %v3158_v2, %s3365_s16  ;;  %v4781_v20 = vsel %vm5252_vm4, %v2035_v17, %v2037_v11  ;;  %v3143_v5 = vpack.i.bf16 %v4680_v53, %v1936_v55  ;;  %v1956_v59 = vsel %vm5253_vm0, %v1953_v16, %v1955_v56  ;;  %vm5254_vm15 = vcmask 1043456   ;;  %vm5256_vm11 = vmmov %vm5252_vm4 }
 0x237   : > { %v3188_v45 = vpack.i.bf16 %v4781_v20, %v2036_v18  ;;  %v3153_v37 = vpack.i.bf16 %v1958_v13, %v1956_v59  ;;  %v1977_v8 = vsel %vm5254_vm15, %v1974_v1, %v1976_v9  ;;  %vm5255_vm9 = vcmask 1042432   ;;  %v3351_v13 = vld [vmem:[%s3453_s13 + $0x20] sm:$0xff]  ;;  %v3353_v1 = vld [vmem:[%s3453_s13 + $0x28] sm:$0xff]  ;;  %vm5257_vm13 = vmmov %vm5252_vm4 }
 0x238   : > { %v3163_v53 = vpack.i.bf16 %v1979_v63, %v1977_v8  ;;  %v1998_v56 = vsel %vm5255_vm9, %v1995_v61, %v1997_v14  ;;  %v2018_v16 = vrot.slane %v4654_v12, 6  ;;  %v3208_v27 = vpack.i.bf16 %v1936_v55, %v4702_v34 }
 0x239   : > { %3124 = vrot.lane.b32.xlu1 %v3123_v29, %s3386_s24  ;;  %v2020_v2 = vrot.slane %v4657_v10, 6  ;;  %v2271_v9 = vmul.f32 %v3352_v15, %v3351_v13  ;;  %v2272_v43 = vmul.f32 %v3353_v1, %v3352_v15  ;;  %v2273_v63 = vmul.f32 %v3354_v4, %v3352_v15  ;;  %v3356_v29 = vld [vmem:[%s5182_s5 + $0x1] ss:$0 sm:$0xff] }
 0x23a   : > { %3169 = vrot.lane.b32.xlu0 %v3168_v42, %s3375_s28  ;;  %v2274_v14 = vmul.f32 %v3355_v21, %v3352_v15  ;;  %v3213_v61 = vpack.i.bf16 %v1956_v59, %v4718_v47  ;;  %v3173_v34 = vpack.i.bf16 %v4744_v3, %v1998_v56  ;;  %v2019_v42 = vsel %vm523_vm5, %v2016_v38, %v2018_v16 }
 0x23b   : > { %v4811_v28 = vadd.f32 %v3356_v29, %v2271_v9  ;;  %v4813_v36 = vadd.f32 %v3356_v29, %v2272_v43  ;;  %v2039_v24 = vrot.slane %v4654_v12, 7  ;;  %v4817_v17 = vadd.f32 %v3356_v29, %v2273_v63 }
 0x23c   : > { %v2021_v47 = vsel %vm523_vm5, %v2018_v16, %v2020_v2  ;;  %v2041_v3 = vrot.slane %v4657_v10, 7  ;;  %v2134_v13 = vsel %vm523_vm5, %v2020_v2, %v3732_v40  ;;  %vm1175_vm5 = vcmask 588800  }
 0x23d   : > { %3134 = vrot.lane.b32.xlu1 %v3133_v31, %s3366_s17  ;;  %v4819_v31 = vadd.f32 %v3356_v29, %v2274_v14  ;;  %v2279_v46 = vsub.f32 0.0, %v4811_v28  ;;  %v2280_v55 = vsub.f32 0.0, %v4813_v36  ;;  %v3183_v59 = vpack.i.bf16 %v2021_v47, %v2019_v42 }
 0x23e   : > { %3179 = vrot.lane.b32.xlu0 %v3178_v19, %s3377_s15  ;;  %v2281_v19 = vsub.f32 0.0, %v4817_v17  ;;  %v2040_v10 = vsel %vm5256_vm11, %v2037_v11, %v2039_v24  ;;  %v3228_v11 = vpack.i.bf16 %v2019_v42, %v4766_v6  ;;  %vm1185_vm0 = vcmask 719872  }
 0x23f   : > { %v2282_v38 = vsub.f32 0.0, %v4819_v31  ;;  %v2283_v18 = vmul.f32 1.442695, %v2279_v46  ;;  %v3233_v43 = vpack.i.bf16 %v2040_v10, %v4781_v20  ;;  %vm1190_vm15 = vcmask 785408  }
 0x240   : > { %vm1195_vm9 = vcmask 850944   ;;  %vm1200_vm11 = vcmask 916480  }
 0x241   : > { %3144 = vrot.lane.b32.xlu1 %v3143_v5, %s3369_s20  ;;  %v2285_v5 = vmul.f32 1.442695, %v2280_v55  ;;  %3335 = vpow2.f32 %v2283_v18 }
 0x242   : > { %3189 = vrot.lane.b32.xlu0 %v3188_v45, %s3379_s9  ;;  %v2287_v45 = vmul.f32 1.442695, %v2281_v19 }
 0x243   : > { %3337 = vpow2.f32 %v2285_v5 }
 0x244   : > { %3339 = vpow2.f32 %v2287_v45 }
 0x245   : > { %3154 = vrot.lane.b32.xlu1 %v3153_v37, %s3371_s22  ;;  %v2289_v37 = vmul.f32 1.442695, %v2282_v38 }
 0x246   : > { %3204 = vrot.lane.b32.xlu0 %v3203_v41, %s3382_s18  ;;  %v3218_v41 = vpack.i.bf16 %v1977_v8, %v4736_v35  ;;  %v3198_v35 = vpack.i.bf16 %v2134_v13, %v2021_v47  ;;  %v2147_v8 = vsel %vm5252_vm4, %v2041_v3, %v3750_v54 }
 0x247   : > { %3341 = vpow2.f32 %v2289_v37 }
 0x249   : > { %3164 = vrot.lane.b32.xlu1 %v3163_v53, %s3365_s16  ;;  %v2042_v53 = vsel %vm5257_vm13, %v2039_v24, %v2041_v3  ;;  %vm1205_vm13 = vcmask 982016  }
 0x24a   : > { %3209 = vrot.lane.b32.xlu0 %v3208_v27, %s3383_s19  ;;  %v3193_v16 = vpack.i.bf16 %v2042_v53, %v2040_v10  ;;  %v3223_v27 = vpack.i.bf16 %v1998_v56, %v4751_v33  ;;  %v3238_v56 = vpack.i.bf16 %v2147_v8, %v2042_v53 }
 0x24b   : > { %v3336_v15 = vpop.eup %3335 }
 0x24c   : > { %v2291_v40 = vadd.f32 1.0, %v3336_v15 }
 0x24d   : > { %3174 = vrot.lane.b32.xlu1 %v3173_v34, %s3375_s28  ;;  %v3338_v9 = vpop.eup %3337  ;;  %s5260_s28 = sshll.u32 %s5270_s29, 5 }
 0x24e   : > { %3214 = vrot.lane.b32.xlu0 %v3213_v61, %s3384_s21  ;;  %v3340_v2 = vpop.eup %3339  ;;  %v2292_v4 = vadd.f32 1.0, %v3338_v9  ;;  %3343 = vrcp.f32 %v2291_v40  ;;  %s5145_s18 = scalar_lea.vmem %s5185_s8, %s5260_s28 }
 0x24f   : > { %v2293_v54 = vadd.f32 1.0, %v3340_v2 }
 0x250   : > { %3345 = vrcp.f32 %v2292_v4 }
 0x251   : > { %3184 = vrot.lane.b32.xlu1 %v3183_v59, %s3377_s15  ;;  %v3342_v6 = vpop.eup %3341  ;;  %3347 = vrcp.f32 %v2293_v54 }
 0x252   : > { %3219 = vrot.lane.b32.xlu0 %v3218_v41, %s3385_s23  ;;  %v2294_v63 = vadd.f32 1.0, %v3342_v6 }
 0x254   : > { %3349 = vrcp.f32 %v2294_v63 }
 0x255   : > { %3194 = vrot.lane.b32.xlu1 %v3193_v16, %s3379_s9 }
 0x256   : > { %3224 = vrot.lane.b32.xlu0 %v3223_v27, %s3386_s24 }
 0x258   : > { %v3344_v29 = vpop.eup %3343 }
 0x259   : > { %3199 = vrot.lane.b32.xlu1 %v3198_v35, %s3387_s14  ;;  %v2299_v47 = vmul.f32 %v3344_v29, %v4811_v28 }
 0x25a   : > { %3229 = vrot.lane.b32.xlu0 %v3228_v11, %s3387_s14  ;;  %v3346_v42 = vpop.eup %3345 }
 0x25b   : > { %v4844_v33 = vpop.permute.xlu1 %2944  ;;  %v3348_v3 = vpop.eup %3347  ;;  %v2300_v46 = vmul.f32 %v3346_v42, %v4813_v36 }
 0x25c   : > { %v4846_v1 = vpop.permute.xlu0 %2949  ;;  %v2301_v19 = vmul.f32 %v3348_v3, %v4817_v17 }
 0x25d   : > { %3239 = vrot.lane.b32.xlu1 %v3238_v56, %s3388_s26  ;;  %v2303_v18 = vpack.c.bf16 %v2300_v46, %v2299_v47  ;;  %v2947_v56 = vunpack.i.h.bf16 %v4844_v33 }
 0x25e   : > { %3234 = vrot.lane.b32.xlu0 %v3233_v43, %s3388_s26  ;;  %v3350_v55 = vpop.eup %3349 }
 0x25f   : > { %v4851_v21 = vpop.permute.xlu1 %2954  ;;  %v2302_v5 = vmul.f32 %v3350_v55, %v4819_v31  ;;  %2605 = vmatprep.mubr.msk.bf16.mxu0 %vm678_vm7, %v2303_v18  ;;  %v2952_v55 = vunpack.i.h.bf16 %v4846_v1 }
 0x260   : > { %v2990_v14 = vpop.permute.xlu0 %2989 }
 0x261   : > { %v2304_v45 = vpack.c.bf16 %v2302_v5, %v2301_v19  ;;  %v2992_v27 = vunpack.i.h.bf16 %v2990_v14  ;;  %v2991_v31 = vunpack.i.l.bf16 %v2990_v14  ;;  %v2951_v5 = vunpack.i.l.bf16 %v4846_v1 }
 0x263   : > { %v4853_v61 = vpop.permute.xlu1 %2959  ;;  %2606 = vmatmul.mubr.msk.bf16.vlgmr.msra.gmra.mrb[12].mxu0 %vm678_vm7, %v2304_v45  ;;  %v1144_v43 = vsel %vm683_vm8, %v4355_v0, %v2992_v27  ;;  %v1143_v4 = vsel %vm683_vm8, %v4345_v58, %v2991_v31  ;;  %vm1180_vm7 = vcmask 654336   ;;  %v2946_v58 = vunpack.i.l.bf16 %v4844_v33 }
 0x264   : > { %v3000_v34 = vpop.permute.xlu0 %2999 }
 0x265   : > { %v3002_v13 = vunpack.i.h.bf16 %v3000_v34  ;;  %v3001_v35 = vunpack.i.l.bf16 %v3000_v34 }
 0x267   : > { %v4855_v20 = vpop.permute.xlu1 %2964  ;;  %v1147_v63 = vsel %vm693_vm10, %v1143_v4, %v3001_v35  ;;  %v1148_v14 = vsel %vm693_vm10, %v1144_v43, %v3002_v13  ;;  %v2962_v43 = vunpack.i.h.bf16 %v4853_v61 }
 0x268   : > { %v3010_v24 = vpop.permute.xlu0 %3009 }
 0x269   : > { %v3012_v8 = vunpack.i.h.bf16 %v3010_v24  ;;  %v3011_v15 = vunpack.i.l.bf16 %v3010_v24 }
 0x26b   : > { %v4860_v38 = vpop.permute.xlu1 %2969  ;;  %v1151_v24 = vsel %vm703_vm12, %v1147_v63, %v3011_v15  ;;  %v1152_v47 = vsel %vm703_vm12, %v1148_v14, %v3012_v8 }
 0x26c   : > { %v3020_v59 = vpop.permute.xlu0 %3019 }
 0x26d   : > { %v3022_v40 = vunpack.i.h.bf16 %v3020_v59  ;;  %v3021_v2 = vunpack.i.l.bf16 %v3020_v59  ;;  %v2957_v59 = vunpack.i.h.bf16 %v4851_v21 }
 0x26f   : > { %v4864_v37 = vpop.permute.xlu1 %2974  ;;  %v1155_v19 = vsel %vm713_vm14, %v1151_v24, %v3021_v2  ;;  %v1156_v18 = vsel %vm713_vm14, %v1152_v47, %v3022_v40  ;;  %v2956_v2 = vunpack.i.l.bf16 %v4851_v21 }
 0x270   : > { %v3030_v28 = vpop.permute.xlu0 %3029 }
 0x271   : > { %v3032_v6 = vunpack.i.h.bf16 %v3030_v28  ;;  %v3031_v54 = vunpack.i.l.bf16 %v3030_v28 }
 0x273   : > { %v4867_v41 = vpop.permute.xlu1 %2979  ;;  %v1159_v45 = vsel %vm723_vm6, %v1155_v19, %v3031_v54  ;;  %v1160_v28 = vsel %vm723_vm6, %v1156_v18, %v3032_v6  ;;  %v2967_v54 = vunpack.i.h.bf16 %v4855_v20 }
 0x274   : > { %v3040_v36 = vpop.permute.xlu0 %3039 }
 0x275   : > { %v3042_v34 = vunpack.i.h.bf16 %v3040_v36  ;;  %v3041_v29 = vunpack.i.l.bf16 %v3040_v36 }
 0x277   : > { %v4869_v10 = vpop.permute.xlu1 %2984  ;;  %v1163_v36 = vsel %vm733_vm3, %v1159_v45, %v3041_v29 }
 0x278   : > { %v3050_v17 = vpop.permute.xlu0 %3049 }
 0x279   : > { %v3052_v3 = vunpack.i.h.bf16 %v3050_v17  ;;  %v3051_v0 = vunpack.i.l.bf16 %v3050_v17  ;;  %v1164_v17 = vsel %vm733_vm3, %v1160_v28, %v3042_v34 }
 0x27b   : > { %v2995_v53 = vpop.permute.xlu1 %2994  ;;  %v1167_v35 = vsel %vm743_vm1, %v1163_v36, %v3051_v0  ;;  %v1168_v8 = vsel %vm743_vm1, %v1164_v17, %v3052_v3 }
 0x27c   : > { %v4871_v16 = vpop.permute.xlu0 %3059  ;;  %v2997_v27 = vunpack.i.h.bf16 %v2995_v53  ;;  %v2996_v31 = vunpack.i.l.bf16 %v2995_v53  ;;  %v2961_v53 = vunpack.i.l.bf16 %v4853_v61  ;;  %v1171_v29 = vsel %vm779_vm2, %v1167_v35, %v2951_v5 }
 0x27d   : > { %v3062_v1 = vunpack.i.h.bf16 %v4871_v16  ;;  %v3061_v15 = vunpack.i.l.bf16 %v4871_v16  ;;  %v1172_v24 = vsel %vm779_vm2, %v1168_v8, %v2952_v55 }
 0x27e   : > { %v1146_v16 = vsel %vm683_vm8, %v4348_v22, %v2997_v27  ;;  %v1145_v34 = vsel %vm683_vm8, %v4358_v50, %v2996_v31 }
 0x27f   : > { %v4873_v11 = vpop.permute.xlu1 %3004  ;;  %v1176_v47 = vsel %vm1175_vm5, %v1171_v29, %v3061_v15  ;;  %v1177_v3 = vsel %vm1175_vm5, %v1172_v24, %v3062_v1 }
 0x280   : > { %v4875_v9 = vpop.permute.xlu0 %3064  ;;  %v3007_v4 = vunpack.i.h.bf16 %v4873_v11  ;;  %v3006_v6 = vunpack.i.l.bf16 %v4873_v11 }
 0x281   : > { %v3067_v63 = vunpack.i.h.bf16 %v4875_v9  ;;  %v3066_v14 = vunpack.i.l.bf16 %v4875_v9 }
 0x282   : > { %v1149_v22 = vsel %vm693_vm10, %v1145_v34, %v3006_v6  ;;  %v1150_v50 = vsel %vm693_vm10, %v1146_v16, %v3007_v4 }
 0x283   : > { %v4884_v42 = vpop.permute.xlu1 %3014  ;;  %v1181_v5 = vsel %vm1180_vm7, %v1176_v47, %v3066_v14  ;;  %v1182_v45 = vsel %vm1180_vm7, %v1177_v3, %v3067_v63 }
 0x284   : > { %v4888_v46 = vpop.permute.xlu0 %3069  ;;  %v3017_v0 = vunpack.i.h.bf16 %v4884_v42  ;;  %v3016_v9 = vunpack.i.l.bf16 %v4884_v42 }
 0x285   : > { %v3072_v18 = vunpack.i.h.bf16 %v4888_v46  ;;  %v3071_v55 = vunpack.i.l.bf16 %v4888_v46 }
 0x286   : > { %v1153_v8 = vsel %vm703_vm12, %v1149_v22, %v3016_v9  ;;  %v1154_v1 = vsel %vm703_vm12, %v1150_v50, %v3017_v0 }
 0x287   : > { %v3025_v13 = vpop.permute.xlu1 %3024  ;;  %v1186_v46 = vsel %vm1185_vm0, %v1181_v5, %v3071_v55  ;;  %v1187_v14 = vsel %vm1185_vm0, %v1182_v45, %v3072_v18 }
 0x288   : > { %v3075_v40 = vpop.permute.xlu0 %3074  ;;  %v3027_v28 = vunpack.i.h.bf16 %v3025_v13  ;;  %v3026_v36 = vunpack.i.l.bf16 %v3025_v13 }
 0x289   : > { %v3077_v17 = vunpack.i.h.bf16 %v3075_v40  ;;  %v3076_v27 = vunpack.i.l.bf16 %v3075_v40 }
 0x28a   : > { %v1157_v13 = vsel %vm713_vm14, %v1153_v8, %v3026_v36  ;;  %v1158_v40 = vsel %vm713_vm14, %v1154_v1, %v3027_v28 }
 0x28b   : > { %v3035_v11 = vpop.permute.xlu1 %3034  ;;  %v1191_v24 = vsel %vm1190_vm15, %v1186_v46, %v3076_v27 }
 0x28c   : > { %v3080_v19 = vpop.permute.xlu0 %3079  ;;  %v3037_v31 = vunpack.i.h.bf16 %v3035_v11  ;;  %v3036_v42 = vunpack.i.l.bf16 %v3035_v11  ;;  %v1192_v11 = vsel %vm1190_vm15, %v1187_v14, %v3077_v17  ;;  %v2977_v14 = vunpack.i.h.bf16 %v4864_v37 }
 0x28d   : > { %v3082_v15 = vunpack.i.h.bf16 %v3080_v19  ;;  %v3081_v4 = vunpack.i.l.bf16 %v3080_v19 }
 0x28e   : > { %v1161_v47 = vsel %vm723_vm6, %v1157_v13, %v3036_v42  ;;  %v1162_v3 = vsel %vm723_vm6, %v1158_v40, %v3037_v31  ;;  %v2981_v40 = vunpack.i.l.bf16 %v4867_v41 }
 0x28f   : > { %v3045_v35 = vpop.permute.xlu1 %3044  ;;  %v1196_v50 = vsel %vm1195_vm9, %v1191_v24, %v3081_v4  ;;  %v1197_v18 = vsel %vm1195_vm9, %v1192_v11, %v3082_v15  ;;  %v2966_v4 = vunpack.i.l.bf16 %v4855_v20 }
 0x290   : > { %v3085_v6 = vpop.permute.xlu0 %3084  ;;  %v3047_v16 = vunpack.i.h.bf16 %v3045_v35  ;;  %v3046_v63 = vunpack.i.l.bf16 %v3045_v35 }
 0x291   : > { %v3087_v34 = vunpack.i.h.bf16 %v3085_v6  ;;  %v3086_v29 = vunpack.i.l.bf16 %v3085_v6  ;;  %v2972_v6 = vunpack.i.h.bf16 %v4860_v38 }
 0x292   : > { %v1165_v55 = vsel %vm733_vm3, %v1161_v47, %v3046_v63  ;;  %v1166_v5 = vsel %vm733_vm3, %v1162_v3, %v3047_v16 }
 0x293   : > { %v3055_v0 = vpop.permute.xlu1 %3054  ;;  %v1201_v27 = vsel %vm1200_vm11, %v1196_v50, %v3086_v29  ;;  %v1202_v31 = vsel %vm1200_vm11, %v1197_v18, %v3087_v34 }
 0x294   : > { %v3057_v9 = vunpack.i.h.bf16 %v3055_v0  ;;  %v3056_v19 = vunpack.i.l.bf16 %v3055_v0  ;;  %v3090_v22 = vpop.permute.xlu0 %3089 }
 0x295   : > { %v3092_v45 = vunpack.i.h.bf16 %v3090_v22  ;;  %v3091_v28 = vunpack.i.l.bf16 %v3090_v22 }
 0x296   : > { %v1169_v36 = vsel %vm743_vm1, %v1165_v55, %v3056_v19  ;;  %v1170_v17 = vsel %vm743_vm1, %v1166_v5, %v3057_v9 }
 0x297   : > { %v1173_v42 = vsel %vm779_vm2, %v1169_v36, %v2946_v58  ;;  %v1174_v35 = vsel %vm779_vm2, %v1170_v17, %v2947_v56  ;;  %v4952_v8 = vpop.permute.xlu1 %3094  ;;  %v1206_v1 = vsel %vm1205_vm13, %v1201_v27, %v3091_v28  ;;  %v1207_v15 = vsel %vm1205_vm13, %v1202_v31, %v3092_v45 }
 0x298   : > { %v1178_v46 = vsel %vm1175_vm5, %v1173_v42, %v2956_v2  ;;  %v1179_v33 = vsel %vm1175_vm5, %v1174_v35, %v2957_v59  ;;  %v4964_v58 = vpop.permute.xlu0 %3099  ;;  %v2971_v56 = vunpack.i.l.bf16 %v4860_v38  ;;  %v2976_v2 = vunpack.i.l.bf16 %v4864_v37 }
 0x299   : > { %v1183_v16 = vsel %vm1180_vm7, %v1178_v46, %v2961_v53  ;;  %v1184_v63 = vsel %vm1180_vm7, %v1179_v33, %v2962_v43  ;;  %v1210_v13 = vpack.c.bf16 %v1207_v15, %v1206_v1  ;;  %v2982_v38 = vunpack.i.h.bf16 %v4867_v41 }
 0x29a   : > { %v1188_v21 = vsel %vm1185_vm0, %v1183_v16, %v2966_v4  ;;  %v1189_v59 = vsel %vm1185_vm0, %v1184_v63, %v2967_v54  ;;  %v2987_v43 = vunpack.i.h.bf16 %v4869_v10  ;;  %v2986_v37 = vunpack.i.l.bf16 %v4869_v10 }
 0x29b   : > { %v4981_v34 = vpop.permute.xlu1 %3104  ;;  %v1193_v53 = vsel %vm1190_vm15, %v1188_v21, %v2971_v56  ;;  %v1194_v61 = vsel %vm1190_vm15, %v1189_v59, %v2972_v6  ;;  %2561 = vmatprep.mubr.bf16.mxu1 %v1210_v13  ;;  %v3097_v36 = vunpack.i.h.bf16 %v4952_v8  ;;  %v3096_v17 = vunpack.i.l.bf16 %v4952_v8 }
 0x29c   : > { %v3130_v29 = vpop.permute.xlu0 %3129  ;;  %v1198_v20 = vsel %vm1195_vm9, %v1193_v53, %v2976_v2  ;;  %v1199_v54 = vsel %vm1195_vm9, %v1194_v61, %v2977_v14  ;;  %v3102_v31 = vunpack.i.h.bf16 %v4964_v58  ;;  %v3101_v42 = vunpack.i.l.bf16 %v4964_v58 }
 0x29d   : > { %v1203_v24 = vsel %vm1200_vm11, %v1198_v20, %v2981_v40  ;;  %v1204_v41 = vsel %vm1200_vm11, %v1199_v54, %v2982_v38  ;;  %v3132_v45 = vunpack.i.h.bf16 %v3130_v29  ;;  %v3107_v15 = vunpack.i.h.bf16 %v4981_v34 }
 0x29e   : > { %v1208_v11 = vsel %vm1205_vm13, %v1203_v24, %v2986_v37  ;;  %v1209_v47 = vsel %vm1205_vm13, %v1204_v41, %v2987_v43  ;;  %v3106_v4 = vunpack.i.l.bf16 %v4981_v34 }
 0x29f   : > { %v4993_v3 = vpop.permute.xlu1 %3109  ;;  %v1211_v0 = vpack.c.bf16 %v1209_v47, %v1208_v11  ;;  %v2161_v6 = vsel %vm683_vm8, %v4662_v57, %v3132_v45 }
 0x2a0   : > { %v3140_v9 = vpop.permute.xlu0 %3139  ;;  %v3112_v33 = vunpack.i.h.bf16 %v4993_v3  ;;  %v3111_v56 = vunpack.i.l.bf16 %v4993_v3 }
 0x2a1   : > { %2562 = vmatmul.mubr.bf16.vlgmr.msra.gmra.mrb[0].mxu1 %v1211_v0  ;;  %v3142_v27 = vunpack.i.h.bf16 %v3140_v9 }
 0x2a2   : > { %2584 = vmatpush3.bf16.msra.mxu1 %v4531_v51 }
 0x2a3   : > { %v4996_v10 = vpop.permute.xlu1 %3114  ;;  %2585 = vmatprep.subr.bf16.mxu1 %v4546_v52  ;;  %v2165_v2 = vsel %vm693_vm10, %v2161_v6, %v3142_v27 }
 0x2a4   : > { %v3150_v19 = vpop.permute.xlu0 %3149  ;;  %v3117_v13 = vunpack.i.h.bf16 %v4996_v10  ;;  %v3116_v21 = vunpack.i.l.bf16 %v4996_v10 }
 0x2a5   : > { %v3151_v35 = vunpack.i.l.bf16 %v3150_v19 }
 0x2a6   : > { %2586 = vmatpush3.bf16.msra.mxu1 %v4546_v52 }
 0x2a7   : > { %v5000_v22 = vpop.permute.xlu1 %3119  ;;  %2587 = vmatprep.subr.bf16.mxu1 %v4561_v49 }
 0x2a8   : > { %v3160_v50 = vpop.permute.xlu0 %3159  ;;  %v3122_v53 = vunpack.i.h.bf16 %v5000_v22  ;;  %v3121_v61 = vunpack.i.l.bf16 %v5000_v22 }
 0x2a9   : > { %v3162_v14 = vunpack.i.h.bf16 %v3160_v50  ;;  %v3161_v16 = vunpack.i.l.bf16 %v3160_v50 }
 0x2aa   : > { %2588 = vmatpush3.bf16.msra.mxu1 %v4561_v49  ;;  %v3131_v49 = vunpack.i.l.bf16 %v3130_v29 }
 0x2ab   : > { %v5004_v18 = vpop.permute.xlu1 %3124  ;;  %2589 = vmatprep.subr.bf16.mxu1 %v4576_v32 }
 0x2ac   : > { %v3170_v55 = vpop.permute.xlu0 %3169  ;;  %v2160_v46 = vsel %vm683_vm8, %v4649_v7, %v3131_v49  ;;  %v3127_v41 = vunpack.i.h.bf16 %v5004_v18  ;;  %v3126_v11 = vunpack.i.l.bf16 %v5004_v18 }
 0x2ad   : > { %v3172_v59 = vunpack.i.h.bf16 %v3170_v55  ;;  %v3171_v38 = vunpack.i.l.bf16 %v3170_v55 }
 0x2ae   : > { %2590 = vmatpush3.bf16.msra.mxu1 %v4576_v32  ;;  %v3141_v32 = vunpack.i.l.bf16 %v3140_v9 }
 0x2af   : > { %v5008_v51 = vpop.permute.xlu1 %3134  ;;  %2591 = vmatprep.subr.bf16.mxu1 %v4592_v48 }
 0x2b0   : > { %v3180_v5 = vpop.permute.xlu0 %3179  ;;  %v2164_v63 = vsel %vm693_vm10, %v2160_v46, %v3141_v32  ;;  %v3137_v47 = vunpack.i.h.bf16 %v5008_v51  ;;  %v3136_v0 = vunpack.i.l.bf16 %v5008_v51 }
 0x2b1   : > { %v2168_v57 = vsel %vm703_vm12, %v2164_v63, %v3151_v35  ;;  %v3182_v43 = vunpack.i.h.bf16 %v3180_v5  ;;  %v3181_v37 = vunpack.i.l.bf16 %v3180_v5 }
 0x2b2   : > { %2592 = vmatpush3.bf16.msra.mxu1 %v4592_v48  ;;  %v3152_v48 = vunpack.i.h.bf16 %v3150_v19  ;;  %v2172_v20 = vsel %vm713_vm14, %v2168_v57, %v3161_v16  ;;  %v2163_v6 = vsel %vm683_vm8, %v4654_v12, %v3137_v47 }
 0x2b3   : > { %v5012_v52 = vpop.permute.xlu1 %3144  ;;  %2593 = vmatprep.subr.bf16.mxu1 %v4616_v44  ;;  %v2176_v9 = vsel %vm723_vm6, %v2172_v20, %v3171_v38 }
 0x2b4   : > { %v3190_v28 = vpop.permute.xlu0 %3189  ;;  %v2169_v7 = vsel %vm703_vm12, %v2165_v2, %v3152_v48  ;;  %v3147_v50 = vunpack.i.h.bf16 %v5012_v52  ;;  %v3146_v55 = vunpack.i.l.bf16 %v5012_v52  ;;  %v2180_v45 = vsel %vm733_vm3, %v2176_v9, %v3181_v37 }
 0x2b5   : > { %v3192_v54 = vunpack.i.h.bf16 %v3190_v28  ;;  %v3191_v24 = vunpack.i.l.bf16 %v3190_v28  ;;  %v2162_v52 = vsel %vm683_vm8, %v4665_v39, %v3136_v0 }
 0x2b6   : > { %2594 = vmatpush3.bf16.msra.mxu1 %v4616_v44  ;;  %v2166_v16 = vsel %vm693_vm10, %v2162_v52, %v3146_v55  ;;  %v2167_v63 = vsel %vm693_vm10, %v2163_v6, %v3147_v50 }
 0x2b7   : > { %v3155_v1 = vpop.permute.xlu1 %3154  ;;  %2595 = vmatprep.subr.bf16.mxu1 %v4621_v26  ;;  %v2184_v51 = vsel %vm743_vm1, %v2180_v45, %v3191_v24 }
 0x2b8   : > { %v3205_v44 = vpop.permute.xlu0 %3204  ;;  %v3157_v28 = vunpack.i.h.bf16 %v3155_v1  ;;  %v3156_v27 = vunpack.i.l.bf16 %v3155_v1  ;;  %v2188_v12 = vsel %vm779_vm2, %v2184_v51, %v3101_v42 }
 0x2b9   : > { %v3207_v48 = vunpack.i.h.bf16 %v3205_v44  ;;  %v3206_v35 = vunpack.i.l.bf16 %v3205_v44 }
 0x2ba   : > { %2596 = vmatpush3.bf16.msra.mxu1 %v4621_v26  ;;  %v2173_v26 = vsel %vm713_vm14, %v2169_v7, %v3162_v14  ;;  %v2170_v7 = vsel %vm703_vm12, %v2166_v16, %v3156_v27 }
 0x2bb   : > { %v3165_v40 = vpop.permute.xlu1 %3164  ;;  %2597 = vmatprep.subr.bf16.mxu1 %v4644_v30  ;;  %v2177_v19 = vsel %vm723_vm6, %v2173_v26, %v3172_v59  ;;  %v2171_v59 = vsel %vm703_vm12, %v2167_v63, %v3157_v28  ;;  %v2192_v38 = vsel %vm1175_vm5, %v2188_v12, %v3206_v35 }
 0x2bc   : > { %v5039_v29 = vpop.permute.xlu0 %3209  ;;  %v2181_v49 = vsel %vm733_vm3, %v2177_v19, %v3182_v43  ;;  %v3167_v46 = vunpack.i.h.bf16 %v3165_v40  ;;  %v3166_v14 = vunpack.i.l.bf16 %v3165_v40 }
 0x2bd   : > { %v3211_v24 = vunpack.i.l.bf16 %v5039_v29 }
 0x2be   : > { %2598 = vmatpush3.bf16.msra.mxu1 %v4644_v30  ;;  %v2185_v30 = vsel %vm743_vm1, %v2181_v49, %v3192_v54  ;;  %v2174_v20 = vsel %vm713_vm14, %v2170_v7, %v3166_v14  ;;  %v2175_v26 = vsel %vm713_vm14, %v2171_v59, %v3167_v46  ;;  %v3212_v54 = vunpack.i.h.bf16 %v5039_v29 }
 0x2bf   : > { %v3175_v5 = vpop.permute.xlu1 %3174  ;;  %v2189_v39 = vsel %vm779_vm2, %v2185_v30, %v3102_v31  ;;  %v2196_v29 = vsel %vm1180_vm7, %v2192_v38, %v3211_v24 }
 0x2c0   : > { %v3215_v32 = vpop.permute.xlu0 %3214  ;;  %v3177_v1 = vunpack.i.h.bf16 %v3175_v5  ;;  %v3176_v2 = vunpack.i.l.bf16 %v3175_v5  ;;  %v2193_v40 = vsel %vm1175_vm5, %v2189_v39, %v3207_v48 }
 0x2c1   : > { %v3217_v31 = vunpack.i.h.bf16 %v3215_v32  ;;  %v3216_v47 = vunpack.i.l.bf16 %v3215_v32  ;;  %v2197_v51 = vsel %vm1180_vm7, %v2193_v40, %v3212_v54 }
 0x2c2   : > { %v2178_v42 = vsel %vm723_vm6, %v2174_v20, %v3176_v2  ;;  %v2179_v58 = vsel %vm723_vm6, %v2175_v26, %v3177_v1 }
 0x2c3   : > { %v3185_v57 = vpop.permute.xlu1 %3184  ;;  %v2200_v48 = vsel %vm1185_vm0, %v2196_v29, %v3216_v47  ;;  %v2201_v35 = vsel %vm1185_vm0, %v2197_v51, %v3217_v31 }
 0x2c4   : > { %v3220_v44 = vpop.permute.xlu0 %3219  ;;  %v3187_v43 = vunpack.i.h.bf16 %v3185_v57  ;;  %v3186_v37 = vunpack.i.l.bf16 %v3185_v57 }
 0x2c5   : > { %v3222_v9 = vunpack.i.h.bf16 %v3220_v44  ;;  %v3221_v19 = vunpack.i.l.bf16 %v3220_v44 }
 0x2c6   : > { %v2182_v45 = vsel %vm733_vm3, %v2178_v42, %v3186_v37  ;;  %v2183_v49 = vsel %vm733_vm3, %v2179_v58, %v3187_v43  ;;  %vm5261_vm3 = vcmask 1046528  }
 0x2c7   : > { %v3195_v0 = vpop.permute.xlu1 %3194  ;;  %v2204_v14 = vsel %vm1190_vm15, %v2200_v48, %v3221_v19  ;;  %v2205_v16 = vsel %vm1190_vm15, %v2201_v35, %v3222_v9 }
 0x2c8   : > { %v3197_v50 = vunpack.i.h.bf16 %v3195_v0  ;;  %v3196_v55 = vunpack.i.l.bf16 %v3195_v0  ;;  %v3225_v5 = vpop.permute.xlu0 %3224 }
 0x2c9   : > { %v3227_v28 = vunpack.i.h.bf16 %v3225_v5  ;;  %v3226_v27 = vunpack.i.l.bf16 %v3225_v5 }
 0x2ca   : > { %v2186_v30 = vsel %vm743_vm1, %v2182_v45, %v3196_v55  ;;  %v2187_v32 = vsel %vm743_vm1, %v2183_v49, %v3197_v50  ;;  %v2486_v45 = vld [vmem:[%s5184_s7] ss:$0 sm:$0xff]  ;;  %vm5258_vm1 = vmmov %vm5252_vm4 }
 0x2cb   : > { %v2190_v6 = vsel %vm779_vm2, %v2186_v30, %v3096_v17  ;;  %v2191_v52 = vsel %vm779_vm2, %v2187_v32, %v3097_v36  ;;  %v3200_v46 = vpop.permute.xlu1 %3199  ;;  %v2208_v17 = vsel %vm1195_vm9, %v2204_v14, %v3226_v27  ;;  %v2209_v57 = vsel %vm1195_vm9, %v2205_v16, %v3227_v28  ;;  %vm5259_vm2 = vmmov %vm5258_vm1 }
 0x2cc   : > { %v2194_v63 = vsel %vm1175_vm5, %v2190_v6, %v3106_v4  ;;  %v2195_v1 = vsel %vm1175_vm5, %v2191_v52, %v3107_v15  ;;  %v3230_v2 = vpop.permute.xlu0 %3229  ;;  %v3202_v59 = vunpack.i.h.bf16 %v3200_v46  ;;  %vm5262_vm6 = vmmov %vm5258_vm1 }
 0x2cd   : > { %v2198_v8 = vsel %vm1180_vm7, %v2194_v63, %v3111_v56  ;;  %v2199_v36 = vsel %vm1180_vm7, %v2195_v1, %v3112_v33  ;;  %v3232_v15 = vunpack.i.h.bf16 %v3230_v2  ;;  %v3231_v7 = vunpack.i.l.bf16 %v3230_v2  ;;  %vm5263_vm10 = vmmov %vm5258_vm1 }
 0x2ce   : > { %v2202_v4 = vsel %vm1185_vm0, %v2198_v8, %v3116_v21  ;;  %v2203_v34 = vsel %vm1185_vm0, %v2199_v36, %v3117_v13  ;;  %v3201_v56 = vunpack.i.l.bf16 %v3200_v46  ;;  %vm5264_vm12 = vmmov %vm5258_vm1 }
 0x2cf   : > { %v2206_v3 = vsel %vm1190_vm15, %v2202_v4, %v3121_v61  ;;  %v2207_v33 = vsel %vm1190_vm15, %v2203_v34, %v3122_v53  ;;  %v3240_v12 = vpop.permute.xlu1 %3239  ;;  %v2212_v53 = vsel %vm1200_vm11, %v2208_v17, %v3231_v7  ;;  %v2213_v43 = vsel %vm1200_vm11, %v2209_v57, %v3232_v15  ;;  %vm5265_vm14 = vmmov %vm5258_vm1 }
 0x2d0   : > { %v2210_v21 = vsel %vm1195_vm9, %v2206_v3, %v3126_v11  ;;  %v2211_v10 = vsel %vm1195_vm9, %v2207_v33, %v3127_v41  ;;  %v3242_v13 = vunpack.i.h.bf16 %v3240_v12  ;;  %v3241_v39 = vunpack.i.l.bf16 %v3240_v12  ;;  %v3235_v44 = vpop.permute.xlu0 %3234  ;;  %vm5266_vm4 = vmmov %vm5261_vm3 }
 0x2d1   : > { %v2214_v38 = vsel %vm1200_vm11, %v2210_v21, %v3201_v56  ;;  %v2215_v61 = vsel %vm1200_vm11, %v2211_v10, %v3202_v59  ;;  %v3237_v40 = vunpack.i.h.bf16 %v3235_v44  ;;  %v3236_v22 = vunpack.i.l.bf16 %v3235_v44  ;;  %vm5267_vm5 = vmmov %vm5258_vm1 }
 0x2d2   : > { %v2218_v37 = vsel %vm1205_vm13, %v2214_v38, %v3241_v39  ;;  %v2219_v11 = vsel %vm1205_vm13, %v2215_v61, %v3242_v13  ;;  %vm5268_vm7 = vmmov %vm5258_vm1 }
 0x2d3   : > { %v2216_v18 = vsel %vm1205_vm13, %v2212_v53, %v3236_v22  ;;  %v2217_v41 = vsel %vm1205_vm13, %v2213_v43, %v3237_v40  ;;  %v2221_v26 = vpack.c.bf16 %v2219_v11, %v2218_v37 }
 0x2d4   : > { %v2220_v20 = vpack.c.bf16 %v2217_v41, %v2216_v18 }
 0x2d6   : > { %2599 = vmatprep.mubr.bf16.mxu1 %v2220_v20 }
 0x2d7   : > { %2600 = vmatmul.mubr.bf16.vlgmr.msra.gmra.mrb[4].mxu1 %v2221_v26 }
 0x336   : > { %v2607_v54 = vpop.f32.mrb[12].mxu0 }
 0x337   : > { %v2345_v24 = vpop.f32.mrb[13].mxu0 }
 0x338   : > { %v2608_v42 = vpop.f32.mrb[14].mxu0 }
 0x339   : > { %v2348_v58 = vpop.f32.mrb[15].mxu0 }
 0x374   : > { %v2563_v31 = vpop.f32.mrb[0].mxu1 }
 0x375   : > { %v1294_v47 = vpop.f32.mrb[1].mxu1  ;;  %v1416_v19 = vrot.slane %v2563_v31, 7 }
 0x376   : > { %v1413_v0 = vrot.slane %v1294_v47, 7  ;;  %v2564_v9 = vpop.f32.mrb[2].mxu1 }
 0x377   : > { %v1418_v50 = vrot.slane %v2564_v9, 7  ;;  %v1424_v55 = vrot.slane %v2564_v9, 6  ;;  %v1297_v5 = vpop.f32.mrb[3].mxu1 }
 0x378   : > { %v1426_v49 = vsel %vm5258_vm1, %v1294_v47, %v1413_v0  ;;  %v1414_v28 = vrot.slane %v1297_v5, 7 }
 0x379   : > { %v1428_v27 = vadd.f32 %v1426_v49, %v4338_v60  ;;  %v1419_v29 = vsel %vm5259_vm2, %v1416_v19, %v1418_v50 }
 0x37a   : > { %v1427_v51 = vsel %vm5261_vm3, %v1419_v29, %v1424_v55  ;;  %v1415_v30 = vsel %vm5262_vm6, %v1413_v0, %v1414_v28  ;;  %v1417_v32 = vsel %vm5263_vm10, %v1414_v28, %v1416_v19 }
 0x37b   : > { %v1438_v48 = vadd.f32 %v2486_v45, %v1428_v27  ;;  %v1431_v60 = vadd.f32 %v4340_v62, %v1427_v51  ;;  %v1429_v35 = vadd.f32 %v1415_v30, %v4342_v23  ;;  %v1430_v6 = vadd.f32 %v4336_v25, %v1417_v32 }
 0x37d   : > { %2387 = vst.msk [vmem:[%s5145_s18] sm:$0xff] %vm683_vm8, %v1438_v48  ;;  %v1441_v52 = vadd.f32 %v2486_v45, %v1431_v60  ;;  %v1439_v46 = vadd.f32 %v2486_v45, %v1429_v35  ;;  %v1440_v14 = vadd.f32 %v2486_v45, %v1430_v6 }
 0x37f   : > { %2390 = vst.msk [vmem:[%s5145_s18 + $0x18] sm:$0xff] %vm683_vm8, %v1441_v52  ;;  %2388 = vst.msk [vmem:[%s5145_s18 + $0x8] sm:$0xff] %vm683_vm8, %v1439_v46 }
 0x380   : > { %2389 = vst.msk [vmem:[%s5145_s18 + $0x10] sm:$0xff] %vm683_vm8, %v1440_v14 }
 0x3aa   : > { %v2601_v16 = vpop.f32.mrb[4].mxu1 }
 0x3ab   : > { %v2256_v63 = vpop.f32.mrb[5].mxu1  ;;  %v2367_v62 = vrot.slane %v2601_v16, 7 }
 0x3ac   : > { %v2364_v1 = vrot.slane %v2256_v63, 7  ;;  %v2602_v2 = vpop.f32.mrb[6].mxu1 }
 0x3ad   : > { %v2369_v23 = vrot.slane %v2602_v2, 7  ;;  %v2375_v8 = vrot.slane %v2602_v2, 6  ;;  %v2259_v25 = vpop.f32.mrb[7].mxu1 }
 0x3ae   : > { %v2377_v36 = vsel %vm5264_vm12, %v2256_v63, %v2364_v1  ;;  %v2365_v17 = vrot.slane %v2259_v25, 7 }
 0x3af   : > { %v2379_v57 = vadd.f32 %v2377_v36, %v2345_v24  ;;  %v2370_v4 = vsel %vm5265_vm14, %v2367_v62, %v2369_v23 }
 0x3b0   : > { %v2378_v34 = vsel %vm5266_vm4, %v2370_v4, %v2375_v8  ;;  %v2368_v15 = vsel %vm5267_vm5, %v2365_v17, %v2367_v62  ;;  %v2366_v7 = vsel %vm5268_vm7, %v2364_v1, %v2365_v17 }
 0x3b1   : > { %v2383_v59 = vadd.f32 %v2486_v45, %v2379_v57  ;;  %v2382_v56 = vadd.f32 %v2608_v42, %v2378_v34  ;;  %v2381_v3 = vadd.f32 %v2607_v54, %v2368_v15  ;;  %v2380_v33 = vadd.f32 %v2366_v7, %v2348_v58 }
 0x3b3   : > { %2391 = vst.msk [vmem:[%s5145_s18 + $0x20] sm:$0xff] %vm683_vm8, %v2383_v59  ;;  %v2386_v12 = vadd.f32 %v2486_v45, %v2382_v56  ;;  %v2385_v21 = vadd.f32 %v2486_v45, %v2381_v3  ;;  %v2384_v10 = vadd.f32 %v2486_v45, %v2380_v33 }
 0x3b5   : > { %2394 = vst.msk [vmem:[%s5145_s18 + $0x38] sm:$0xff] %vm683_vm8, %v2386_v12  ;;  %2393 = vst.msk [vmem:[%s5145_s18 + $0x30] sm:$0xff] %vm683_vm8, %v2385_v21 }
 0x3b6   : > { %2392 = vst.msk [vmem:[%s5145_s18 + $0x28] sm:$0xff] %vm683_vm8, %v2384_v10 }
 0x3b7 PF: > { %s18_s27 = sadd.s32 1, %s3363_s27  }
 0x3b8   : > { %p15_p4 = scmp.ge.s32.totalorder %s18_s27, 4  }
 0x3ba   :  { %17 = sbr.rel (!%p15_p4) target bundleno = 1 (0x1), region = 82 }

</bundles_post_ra>
